<compile_context>
chip_gen: v6e
topology: v6e:2x2x1
jax: 0.10.0
libtpu: 0.0.40
codegen_flags: <defaults>
</compile_context>

<pallas_src>
import functools

import jax
import jax.numpy as jnp
from jax.experimental import pallas as pl
from jax.experimental.pallas import tpu as pltpu


def actor_kernel(max_action, T,
                 x_ref, wih_ref, whh_ref, bi_ref, bhn_ref,
                 w2_ref, b2_ref, w3_ref, b3_ref,
                 out_ref, gi_ref):
    """Single invocation (no grid). All operands are whole-array VMEM blocks.

    GRU (PyTorch semantics, single layer):
      r = sigmoid(x W_ir^T + b_ir + h W_hr^T + b_hr)
      z = sigmoid(x W_iz^T + b_iz + h W_hz^T + b_hz)
      n = tanh  (x W_in^T + b_in + r*(h W_hn^T + b_hn))
      h = (1-z)*n + z*h
    x_ref is time-major flattened: (T*B, S), bf16.
    gi_ref is a VMEM scratch (T*B, 3H) f32 holding the hoisted input projection.
    """
    TB, _ = x_ref.shape
    B = TB // T
    H = whh_ref.shape[0]

    # ---- Hoisted input projection: one (T*B, S) @ (S, 3H) matmul --------------
    # r/z biases (and b_in) are pre-folded into bi in the wrapper. Result goes to
    # a time-major VMEM scratch so the recurrence only does cheap contiguous loads.
    gi_ref[...] = (jnp.dot(x_ref[...], wih_ref[...],
                           preferred_element_type=jnp.float32)
                   + bi_ref[...])

    whh = whh_ref[...]                                   # (H, 3H) bf16, resident
    bhn = jnp.broadcast_to(bhn_ref[...], (B, H))         # hoist broadcast out of loop

    # ---- GRU recurrence, fully unrolled (T static); h stays in registers ------
    # TODO(synk): verify via bundle dump whether Mosaic hoists the loop-invariant
    # W_hh push in the unrolled loop; if not, stage it once with
    # pltpu.matmul_push_rhs / matmul_acc_lhs / matmul_pop across the T steps.
    h = jnp.zeros((B, H), jnp.float32)
    for t in range(T):
        # Contiguous, tile-aligned 3-vreg load (static slice -> zero-cost view).
        gi = gi_ref[pl.ds(t * B, B), :]                  # (B, 3H) f32
        gh = jnp.dot(h.astype(jnp.bfloat16), whh,
                     preferred_element_type=jnp.float32)  # (B, 3H) f32

        r_pre = gi[:, 0:H] + gh[:, 0:H]
        z_pre = gi[:, H:2 * H] + gh[:, H:2 * H]
        # sigmoid via EUP exp + approx reciprocal (keeps the divide off the VALU).
        r = pl.reciprocal(1.0 + jnp.exp(-r_pre), approx=True)
        z = pl.reciprocal(1.0 + jnp.exp(-z_pre), approx=True)
        n = jnp.tanh(gi[:, 2 * H:3 * H] + r * (gh[:, 2 * H:3 * H] + bhn))
        h = n + z * (h - n)                               # == (1-z)*n + z*h

    # ---- Head on the last hidden state: relu(l2(h)); max_action*tanh(l3(.)) ---
    y = jnp.dot(h.astype(jnp.bfloat16), w2_ref[...],
                preferred_element_type=jnp.float32) + b2_ref[...]
    y = jnp.maximum(y, 0.0)
    a = jnp.dot(y.astype(jnp.bfloat16), w3_ref[...],
                preferred_element_type=jnp.float32) + b3_ref[...]
    out_ref[...] = max_action * jnp.tanh(a)


@functools.partial(jax.jit, static_argnums=(2,))
def actor_forward(x_bts, params, max_action):
    """x_bts: (B, T, S) float32 (PyTorch batch_first convention)."""
    wih_t, whh_t, bih, bhh, w2_t, b2, w3_t, b3 = params
    B, T, S = x_bts.shape
    H = whh_t.shape[0]
    H2 = w2_t.shape[1]
    A = w3_t.shape[1]

    # Pre-fold r/z gate biases; keep b_hn separate (inside r*(h W_hn + b_hn)).
    bi = jnp.concatenate([bih[:, 0:H] + bhh[:, 0:H],
                          bih[:, H:2 * H] + bhh[:, H:2 * H],
                          bih[:, 2 * H:3 * H]], axis=1)        # (1, 3H)
    bhn = bhh[:, 2 * H:3 * H]                                   # (1, H)

    # Time-major, flattened, bf16 input (halves DMA; MXU-native dtype).
    x_tb = jnp.transpose(x_bts, (1, 0, 2)).reshape(T * B, S).astype(jnp.bfloat16)

    bf16 = lambda w: w.astype(jnp.bfloat16)                     # MXU-native weight dtype
    vmem = lambda: pl.BlockSpec(memory_space=pltpu.MemorySpace.VMEM)

    flops = (2 * B * T * S * 3 * H          # input projection
             + T * 2 * B * H * 3 * H        # recurrence
             + 2 * B * H * H2 + 2 * B * H2 * A)
    transcendentals = T * B * 3 * H + B * A
    bytes_accessed = (x_tb.size * 2 + (wih_t.size + whh_t.size + w2_t.size + w3_t.size) * 2
                      + (bi.size + bhn.size + b2.size + b3.size) * 4 + B * A * 4)

    # NOTE(v7x scaling): whole-(B,T)-in-one-block footprint grows as B*T*(S+3H)*4 bytes;
    # once B >= 16, add a batch grid (block = multiple of 8 sublanes) with
    # dimension_semantics=("parallel",) and an explicit vmem_limit_bytes to split
    # across the two TensorCores and stay under v7x's 64 MiB VMEM. At B=8 keep gridless.
    kernel = functools.partial(actor_kernel, float(max_action), T)
    return pl.pallas_call(
        kernel,
        out_shape=jax.ShapeDtypeStruct((B, A), jnp.float32),
        in_specs=[vmem() for _ in range(9)],
        out_specs=vmem(),
        scratch_shapes=[pltpu.VMEM((T * B, 3 * H), jnp.float32)],
        cost_estimate=pl.CostEstimate(flops=flops,
                                      transcendentals=transcendentals,
                                      bytes_accessed=bytes_accessed),
    )(x_tb, bf16(wih_t), bf16(whh_t), bi, bhn,
      bf16(w2_t), b2, bf16(w3_t), b3)


def actor_reference(x_bts, params, max_action):
    """Pure-JAX f32 reference mirroring the PyTorch forward."""
    wih_t, whh_t, bih, bhh, w2_t, b2, w3_t, b3 = params
    B, T, S = x_bts.shape
    H = whh_t.shape[0]
    h = jnp.zeros((B, H), jnp.float32)
    for t in range(T):
        gi = x_bts[:, t, :] @ wih_t + bih
        gh = h @ whh_t + bhh
        r = jax.nn.sigmoid(gi[:, :H] + gh[:, :H])
        z = jax.nn.sigmoid(gi[:, H:2 * H] + gh[:, H:2 * H])
        n = jnp.tanh(gi[:, 2 * H:] + r * gh[:, 2 * H:])
        h = (1.0 - z) * n + z * h
    y = jnp.maximum(h @ w2_t + b2, 0.0)
    return max_action * jnp.tanh(y @ w3_t + b3)


def init_params(key, state_dim, action_dim, l1_hidden, l2_hidden):
    """Deterministic uniform init (same shapes as the PyTorch module, pre-transposed)."""
    ks = jax.random.split(key, 8)
    k1 = 1.0 / jnp.sqrt(l1_hidden)
    k2 = 1.0 / jnp.sqrt(l1_hidden)
    k3 = 1.0 / jnp.sqrt(l2_hidden)
    u = lambda k, shape, s: jax.random.uniform(k, shape, jnp.float32, -s, s)
    wih_t = u(ks[0], (state_dim, 3 * l1_hidden), k1)   # = gru.weight_ih_l0.T
    whh_t = u(ks[1], (l1_hidden, 3 * l1_hidden), k1)   # = gru.weight_hh_l0.T
    bih = u(ks[2], (1, 3 * l1_hidden), k1)
    bhh = u(ks[3], (1, 3 * l1_hidden), k1)
    w2_t = u(ks[4], (l1_hidden, l2_hidden), k2)        # = l2.weight.T
    b2 = u(ks[5], (1, l2_hidden), k2)
    w3_t = u(ks[6], (l2_hidden, action_dim), k3)       # = l3.weight.T
    b3 = u(ks[7], (1, action_dim), k3)
    return (wih_t, whh_t, bih, bhh, w2_t, b2, w3_t, b3)


if __name__ == "__main__":
    B, T, S = 8, 8, 16           # batch, sequence length, state_dim
    H1, H2, A = 128, 128, 8      # l1_hidden_dim, l2_hidden_dim, action_dim
    MAX_ACTION = 2.0

    key = jax.random.PRNGKey(0)
    kx, kp = jax.random.split(key)
    x = jax.random.normal(kx, (B, T, S), jnp.float32)
    params = init_params(kp, S, A, H1, H2)

    out = jax.block_until_ready(actor_forward(x, params, MAX_ACTION))

    ref = actor_reference(x, params, MAX_ACTION)
    assert out.shape == (B, A)
    # bf16 weights + approx-reciprocal gates -> loosened tolerance vs pure-f32 reference.
    assert jnp.allclose(out, ref, atol=5e-2, rtol=5e-2), "mismatch vs reference"

    print("KERNEL_OK")
</pallas_src>

<mosaic_0001>
module attributes {stable_mosaic.version = 11 : i64} {
  func.func @actor_kernel(%arg0: memref<64x16xbf16, #tpu.memory_space<vmem>>, %arg1: memref<16x384xbf16, #tpu.memory_space<vmem>>, %arg2: memref<128x384xbf16, #tpu.memory_space<vmem>>, %arg3: memref<1x384xf32, #tpu.memory_space<vmem>>, %arg4: memref<1x128xf32, #tpu.memory_space<vmem>>, %arg5: memref<128x128xbf16, #tpu.memory_space<vmem>>, %arg6: memref<1x128xf32, #tpu.memory_space<vmem>>, %arg7: memref<128x8xbf16, #tpu.memory_space<vmem>>, %arg8: memref<1x8xf32, #tpu.memory_space<vmem>>, %arg9: memref<8x8xf32, #tpu.memory_space<vmem>>, %arg10: memref<64x384xf32, #tpu.memory_space<vmem>>) attributes {dimension_semantics = [], scalar_prefetch = 0 : i64, scratch_operands = 1 : i64, tpu.core_type = #tpu.core_type<tc>} {
    %c0 = arith.constant 0 : index
    %c0_0 = arith.constant 0 : index
    %0 = vector.load %arg0[%c0, %c0_0] : memref<64x16xbf16, #tpu.memory_space<vmem>>, vector<64x16xbf16>
    %c0_1 = arith.constant 0 : index
    %c0_2 = arith.constant 0 : index
    %1 = vector.load %arg1[%c0_1, %c0_2] : memref<16x384xbf16, #tpu.memory_space<vmem>>, vector<16x384xbf16>
    %cst = arith.constant dense<0.000000e+00> : vector<64x384xf32>
    %2 = tpu.matmul %0, %1, %cst {dimension_numbers = #tpu.dot_dimension_numbers<[1], [0], [0], [1], [0, 0, 1, 1], [], []>} : vector<64x16xbf16>, vector<16x384xbf16>, vector<64x384xf32> -> vector<64x384xf32>
    %c0_3 = arith.constant 0 : index
    %c0_4 = arith.constant 0 : index
    %3 = vector.load %arg3[%c0_3, %c0_4] : memref<1x384xf32, #tpu.memory_space<vmem>>, vector<1x384xf32>
    %4 = vector.broadcast %3 : vector<1x384xf32> to vector<64x384xf32>
    %5 = arith.addf %2, %4 : vector<64x384xf32>
    %c0_5 = arith.constant 0 : index
    %c0_6 = arith.constant 0 : index
    %6 = vector.load %arg10[%c0_5, %c0_6] : memref<64x384xf32, #tpu.memory_space<vmem>>, vector<64x384xf32>
    tpu.vector_store %arg10[%c0_5, %c0_6], %5 {strides = array<i32>} : memref<64x384xf32, #tpu.memory_space<vmem>>, vector<64x384xf32>,
    %c0_7 = arith.constant 0 : index
    %c0_8 = arith.constant 0 : index
    %7 = vector.load %arg2[%c0_7, %c0_8] : memref<128x384xbf16, #tpu.memory_space<vmem>>, vector<128x384xbf16>
    %c0_9 = arith.constant 0 : index
    %c0_10 = arith.constant 0 : index
    %8 = vector.load %arg4[%c0_9, %c0_10] : memref<1x128xf32, #tpu.memory_space<vmem>>, vector<1x128xf32>
    %9 = vector.shape_cast %8 : vector<1x128xf32> to vector<1x128xf32>
    %10 = vector.broadcast %9 : vector<1x128xf32> to vector<8x128xf32>
    %cst_11 = arith.constant 0.000000e+00 : f32
    %11 = vector.broadcast %cst_11 : f32 to vector<8x128xf32>
    %c0_12 = arith.constant 0 : index
    %c0_13 = arith.constant 0 : index
    %12 = vector.load %arg10[%c0_12, %c0_13] : memref<64x384xf32, #tpu.memory_space<vmem>>, vector<8x384xf32>
    %13 = arith.truncf %11 : vector<8x128xf32> to vector<8x128xbf16>
    %cst_14 = arith.constant dense<0.000000e+00> : vector<8x384xf32>
    %14 = tpu.matmul %13, %7, %cst_14 {dimension_numbers = #tpu.dot_dimension_numbers<[1], [0], [0], [1], [0, 0, 1, 1], [], []>} : vector<8x128xbf16>, vector<128x384xbf16>, vector<8x384xf32> -> vector<8x384xf32>
    %15 = vector.extract_strided_slice %12 {offsets = [0, 0], sizes = [8, 128], strides = [1, 1]} : vector<8x384xf32> to vector<8x128xf32>
    %16 = vector.extract_strided_slice %14 {offsets = [0, 0], sizes = [8, 128], strides = [1, 1]} : vector<8x384xf32> to vector<8x128xf32>
    %17 = arith.addf %15, %16 : vector<8x128xf32>
    %18 = vector.extract_strided_slice %12 {offsets = [0, 128], sizes = [8, 128], strides = [1, 1]} : vector<8x384xf32> to vector<8x128xf32>
    %19 = vector.extract_strided_slice %14 {offsets = [0, 128], sizes = [8, 128], strides = [1, 1]} : vector<8x384xf32> to vector<8x128xf32>
    %20 = arith.addf %18, %19 : vector<8x128xf32>
    %cst_15 = arith.constant 0.000000e+00 : f32
    %21 = vector.broadcast %cst_15 : f32 to vector<8x128xf32>
    %22 = arith.subf %21, %17 : vector<8x128xf32>
    %23 = math.exp %22 : vector<8x128xf32>
    %cst_16 = arith.constant 1.000000e+00 : f32
    %24 = vector.broadcast %cst_16 : f32 to vector<8x128xf32>
    %25 = arith.addf %24, %23 : vector<8x128xf32>
    %26 = tpu.reciprocal %25 {approx = true} : vector<8x128xf32> -> vector<8x128xf32>
    %cst_17 = arith.constant 0.000000e+00 : f32
    %27 = vector.broadcast %cst_17 : f32 to vector<8x128xf32>
    %28 = arith.subf %27, %20 : vector<8x128xf32>
    %29 = math.exp %28 : vector<8x128xf32>
    %cst_18 = arith.constant 1.000000e+00 : f32
    %30 = vector.broadcast %cst_18 : f32 to vector<8x128xf32>
    %31 = arith.addf %30, %29 : vector<8x128xf32>
    %32 = tpu.reciprocal %31 {approx = true} : vector<8x128xf32> -> vector<8x128xf32>
    %33 = vector.extract_strided_slice %12 {offsets = [0, 256], sizes = [8, 128], strides = [1, 1]} : vector<8x384xf32> to vector<8x128xf32>
    %34 = vector.extract_strided_slice %14 {offsets = [0, 256], sizes = [8, 128], strides = [1, 1]} : vector<8x384xf32> to vector<8x128xf32>
    %35 = arith.addf %34, %10 : vector<8x128xf32>
    %36 = arith.mulf %26, %35 : vector<8x128xf32>
    %37 = arith.addf %33, %36 : vector<8x128xf32>
    %38 = math.tanh %37 : vector<8x128xf32>
    %39 = arith.subf %11, %38 : vector<8x128xf32>
    %40 = arith.mulf %32, %39 : vector<8x128xf32>
    %41 = arith.addf %38, %40 : vector<8x128xf32>
    %c8 = arith.constant 8 : index
    %c0_19 = arith.constant 0 : index
    %42 = vector.load %arg10[%c8, %c0_19] : memref<64x384xf32, #tpu.memory_space<vmem>>, vector<8x384xf32>
    %43 = arith.truncf %41 : vector<8x128xf32> to vector<8x128xbf16>
    %cst_20 = arith.constant dense<0.000000e+00> : vector<8x384xf32>
    %44 = tpu.matmul %43, %7, %cst_20 {dimension_numbers = #tpu.dot_dimension_numbers<[1], [0], [0], [1], [0, 0, 1, 1], [], []>} : vector<8x128xbf16>, vector<128x384xbf16>, vector<8x384xf32> -> vector<8x384xf32>
    %45 = vector.extract_strided_slice %42 {offsets = [0, 0], sizes = [8, 128], strides = [1, 1]} : vector<8x384xf32> to vector<8x128xf32>
    %46 = vector.extract_strided_slice %44 {offsets = [0, 0], sizes = [8, 128], strides = [1, 1]} : vector<8x384xf32> to vector<8x128xf32>
    %47 = arith.addf %45, %46 : vector<8x128xf32>
    %48 = vector.extract_strided_slice %42 {offsets = [0, 128], sizes = [8, 128], strides = [1, 1]} : vector<8x384xf32> to vector<8x128xf32>
    %49 = vector.extract_strided_slice %44 {offsets = [0, 128], sizes = [8, 128], strides = [1, 1]} : vector<8x384xf32> to vector<8x128xf32>
    %50 = arith.addf %48, %49 : vector<8x128xf32>
    %cst_21 = arith.constant 0.000000e+00 : f32
    %51 = vector.broadcast %cst_21 : f32 to vector<8x128xf32>
    %52 = arith.subf %51, %47 : vector<8x128xf32>
    %53 = math.exp %52 : vector<8x128xf32>
    %cst_22 = arith.constant 1.000000e+00 : f32
    %54 = vector.broadcast %cst_22 : f32 to vector<8x128xf32>
    %55 = arith.addf %54, %53 : vector<8x128xf32>
    %56 = tpu.reciprocal %55 {approx = true} : vector<8x128xf32> -> vector<8x128xf32>
    %cst_23 = arith.constant 0.000000e+00 : f32
    %57 = vector.broadcast %cst_23 : f32 to vector<8x128xf32>
    %58 = arith.subf %57, %50 : vector<8x128xf32>
    %59 = math.exp %58 : vector<8x128xf32>
    %cst_24 = arith.constant 1.000000e+00 : f32
    %60 = vector.broadcast %cst_24 : f32 to vector<8x128xf32>
    %61 = arith.addf %60, %59 : vector<8x128xf32>
    %62 = tpu.reciprocal %61 {approx = true} : vector<8x128xf32> -> vector<8x128xf32>
    %63 = vector.extract_strided_slice %42 {offsets = [0, 256], sizes = [8, 128], strides = [1, 1]} : vector<8x384xf32> to vector<8x128xf32>
    %64 = vector.extract_strided_slice %44 {offsets = [0, 256], sizes = [8, 128], strides = [1, 1]} : vector<8x384xf32> to vector<8x128xf32>
    %65 = arith.addf %64, %10 : vector<8x128xf32>
    %66 = arith.mulf %56, %65 : vector<8x128xf32>
    %67 = arith.addf %63, %66 : vector<8x128xf32>
    %68 = math.tanh %67 : vector<8x128xf32>
    %69 = arith.subf %41, %68 : vector<8x128xf32>
    %70 = arith.mulf %62, %69 : vector<8x128xf32>
    %71 = arith.addf %68, %70 : vector<8x128xf32>
    %c16 = arith.constant 16 : index
    %c0_25 = arith.constant 0 : index
    %72 = vector.load %arg10[%c16, %c0_25] : memref<64x384xf32, #tpu.memory_space<vmem>>, vector<8x384xf32>
    %73 = arith.truncf %71 : vector<8x128xf32> to vector<8x128xbf16>
    %cst_26 = arith.constant dense<0.000000e+00> : vector<8x384xf32>
    %74 = tpu.matmul %73, %7, %cst_26 {dimension_numbers = #tpu.dot_dimension_numbers<[1], [0], [0], [1], [0, 0, 1, 1], [], []>} : vector<8x128xbf16>, vector<128x384xbf16>, vector<8x384xf32> -> vector<8x384xf32>
    %75 = vector.extract_strided_slice %72 {offsets = [0, 0], sizes = [8, 128], strides = [1, 1]} : vector<8x384xf32> to vector<8x128xf32>
    %76 = vector.extract_strided_slice %74 {offsets = [0, 0], sizes = [8, 128], strides = [1, 1]} : vector<8x384xf32> to vector<8x128xf32>
    %77 = arith.addf %75, %76 : vector<8x128xf32>
    %78 = vector.extract_strided_slice %72 {offsets = [0, 128], sizes = [8, 128], strides = [1, 1]} : vector<8x384xf32> to vector<8x128xf32>
    %79 = vector.extract_strided_slice %74 {offsets = [0, 128], sizes = [8, 128], strides = [1, 1]} : vector<8x384xf32> to vector<8x128xf32>
    %80 = arith.addf %78, %79 : vector<8x128xf32>
    %cst_27 = arith.constant 0.000000e+00 : f32
    %81 = vector.broadcast %cst_27 : f32 to vector<8x128xf32>
    %82 = arith.subf %81, %77 : vector<8x128xf32>
    %83 = math.exp %82 : vector<8x128xf32>
    %cst_28 = arith.constant 1.000000e+00 : f32
    %84 = vector.broadcast %cst_28 : f32 to vector<8x128xf32>
    %85 = arith.addf %84, %83 : vector<8x128xf32>
    %86 = tpu.reciprocal %85 {approx = true} : vector<8x128xf32> -> vector<8x128xf32>
    %cst_29 = arith.constant 0.000000e+00 : f32
    %87 = vector.broadcast %cst_29 : f32 to vector<8x128xf32>
    %88 = arith.subf %87, %80 : vector<8x128xf32>
    %89 = math.exp %88 : vector<8x128xf32>
    %cst_30 = arith.constant 1.000000e+00 : f32
    %90 = vector.broadcast %cst_30 : f32 to vector<8x128xf32>
    %91 = arith.addf %90, %89 : vector<8x128xf32>
    %92 = tpu.reciprocal %91 {approx = true} : vector<8x128xf32> -> vector<8x128xf32>
    %93 = vector.extract_strided_slice %72 {offsets = [0, 256], sizes = [8, 128], strides = [1, 1]} : vector<8x384xf32> to vector<8x128xf32>
    %94 = vector.extract_strided_slice %74 {offsets = [0, 256], sizes = [8, 128], strides = [1, 1]} : vector<8x384xf32> to vector<8x128xf32>
    %95 = arith.addf %94, %10 : vector<8x128xf32>
    %96 = arith.mulf %86, %95 : vector<8x128xf32>
    %97 = arith.addf %93, %96 : vector<8x128xf32>
    %98 = math.tanh %97 : vector<8x128xf32>
    %99 = arith.subf %71, %98 : vector<8x128xf32>
    %100 = arith.mulf %92, %99 : vector<8x128xf32>
    %101 = arith.addf %98, %100 : vector<8x128xf32>
    %c24 = arith.constant 24 : index
    %c0_31 = arith.constant 0 : index
    %102 = vector.load %arg10[%c24, %c0_31] : memref<64x384xf32, #tpu.memory_space<vmem>>, vector<8x384xf32>
    %103 = arith.truncf %101 : vector<8x128xf32> to vector<8x128xbf16>
    %cst_32 = arith.constant dense<0.000000e+00> : vector<8x384xf32>
    %104 = tpu.matmul %103, %7, %cst_32 {dimension_numbers = #tpu.dot_dimension_numbers<[1], [0], [0], [1], [0, 0, 1, 1], [], []>} : vector<8x128xbf16>, vector<128x384xbf16>, vector<8x384xf32> -> vector<8x384xf32>
    %105 = vector.extract_strided_slice %102 {offsets = [0, 0], sizes = [8, 128], strides = [1, 1]} : vector<8x384xf32> to vector<8x128xf32>
    %106 = vector.extract_strided_slice %104 {offsets = [0, 0], sizes = [8, 128], strides = [1, 1]} : vector<8x384xf32> to vector<8x128xf32>
    %107 = arith.addf %105, %106 : vector<8x128xf32>
    %108 = vector.extract_strided_slice %102 {offsets = [0, 128], sizes = [8, 128], strides = [1, 1]} : vector<8x384xf32> to vector<8x128xf32>
    %109 = vector.extract_strided_slice %104 {offsets = [0, 128], sizes = [8, 128], strides = [1, 1]} : vector<8x384xf32> to vector<8x128xf32>
    %110 = arith.addf %108, %109 : vector<8x128xf32>
    %cst_33 = arith.constant 0.000000e+00 : f32
    %111 = vector.broadcast %cst_33 : f32 to vector<8x128xf32>
    %112 = arith.subf %111, %107 : vector<8x128xf32>
    %113 = math.exp %112 : vector<8x128xf32>
    %cst_34 = arith.constant 1.000000e+00 : f32
    %114 = vector.broadcast %cst_34 : f32 to vector<8x128xf32>
    %115 = arith.addf %114, %113 : vector<8x128xf32>
    %116 = tpu.reciprocal %115 {approx = true} : vector<8x128xf32> -> vector<8x128xf32>
    %cst_35 = arith.constant 0.000000e+00 : f32
    %117 = vector.broadcast %cst_35 : f32 to vector<8x128xf32>
    %118 = arith.subf %117, %110 : vector<8x128xf32>
    %119 = math.exp %118 : vector<8x128xf32>
    %cst_36 = arith.constant 1.000000e+00 : f32
    %120 = vector.broadcast %cst_36 : f32 to vector<8x128xf32>
    %121 = arith.addf %120, %119 : vector<8x128xf32>
    %122 = tpu.reciprocal %121 {approx = true} : vector<8x128xf32> -> vector<8x128xf32>
    %123 = vector.extract_strided_slice %102 {offsets = [0, 256], sizes = [8, 128], strides = [1, 1]} : vector<8x384xf32> to vector<8x128xf32>
    %124 = vector.extract_strided_slice %104 {offsets = [0, 256], sizes = [8, 128], strides = [1, 1]} : vector<8x384xf32> to vector<8x128xf32>
    %125 = arith.addf %124, %10 : vector<8x128xf32>
    %126 = arith.mulf %116, %125 : vector<8x128xf32>
    %127 = arith.addf %123, %126 : vector<8x128xf32>
    %128 = math.tanh %127 : vector<8x128xf32>
    %129 = arith.subf %101, %128 : vector<8x128xf32>
    %130 = arith.mulf %122, %129 : vector<8x128xf32>
    %131 = arith.addf %128, %130 : vector<8x128xf32>
    %c32 = arith.constant 32 : index
    %c0_37 = arith.constant 0 : index
    %132 = vector.load %arg10[%c32, %c0_37] : memref<64x384xf32, #tpu.memory_space<vmem>>, vector<8x384xf32>
    %133 = arith.truncf %131 : vector<8x128xf32> to vector<8x128xbf16>
    %cst_38 = arith.constant dense<0.000000e+00> : vector<8x384xf32>
    %134 = tpu.matmul %133, %7, %cst_38 {dimension_numbers = #tpu.dot_dimension_numbers<[1], [0], [0], [1], [0, 0, 1, 1], [], []>} : vector<8x128xbf16>, vector<128x384xbf16>, vector<8x384xf32> -> vector<8x384xf32>
    %135 = vector.extract_strided_slice %132 {offsets = [0, 0], sizes = [8, 128], strides = [1, 1]} : vector<8x384xf32> to vector<8x128xf32>
    %136 = vector.extract_strided_slice %134 {offsets = [0, 0], sizes = [8, 128], strides = [1, 1]} : vector<8x384xf32> to vector<8x128xf32>
    %137 = arith.addf %135, %136 : vector<8x128xf32>
    %138 = vector.extract_strided_slice %132 {offsets = [0, 128], sizes = [8, 128], strides = [1, 1]} : vector<8x384xf32> to vector<8x128xf32>
    %139 = vector.extract_strided_slice %134 {offsets = [0, 128], sizes = [8, 128], strides = [1, 1]} : vector<8x384xf32> to vector<8x128xf32>
    %140 = arith.addf %138, %139 : vector<8x128xf32>
    %cst_39 = arith.constant 0.000000e+00 : f32
    %141 = vector.broadcast %cst_39 : f32 to vector<8x128xf32>
    %142 = arith.subf %141, %137 : vector<8x128xf32>
    %143 = math.exp %142 : vector<8x128xf32>
    %cst_40 = arith.constant 1.000000e+00 : f32
    %144 = vector.broadcast %cst_40 : f32 to vector<8x128xf32>
    %145 = arith.addf %144, %143 : vector<8x128xf32>
    %146 = tpu.reciprocal %145 {approx = true} : vector<8x128xf32> -> vector<8x128xf32>
    %cst_41 = arith.constant 0.000000e+00 : f32
    %147 = vector.broadcast %cst_41 : f32 to vector<8x128xf32>
    %148 = arith.subf %147, %140 : vector<8x128xf32>
    %149 = math.exp %148 : vector<8x128xf32>
    %cst_42 = arith.constant 1.000000e+00 : f32
    %150 = vector.broadcast %cst_42 : f32 to vector<8x128xf32>
    %151 = arith.addf %150, %149 : vector<8x128xf32>
    %152 = tpu.reciprocal %151 {approx = true} : vector<8x128xf32> -> vector<8x128xf32>
    %153 = vector.extract_strided_slice %132 {offsets = [0, 256], sizes = [8, 128], strides = [1, 1]} : vector<8x384xf32> to vector<8x128xf32>
    %154 = vector.extract_strided_slice %134 {offsets = [0, 256], sizes = [8, 128], strides = [1, 1]} : vector<8x384xf32> to vector<8x128xf32>
    %155 = arith.addf %154, %10 : vector<8x128xf32>
    %156 = arith.mulf %146, %155 : vector<8x128xf32>
    %157 = arith.addf %153, %156 : vector<8x128xf32>
    %158 = math.tanh %157 : vector<8x128xf32>
    %159 = arith.subf %131, %158 : vector<8x128xf32>
    %160 = arith.mulf %152, %159 : vector<8x128xf32>
    %161 = arith.addf %158, %160 : vector<8x128xf32>
    %c40 = arith.constant 40 : index
    %c0_43 = arith.constant 0 : index
    %162 = vector.load %arg10[%c40, %c0_43] : memref<64x384xf32, #tpu.memory_space<vmem>>, vector<8x384xf32>
    %163 = arith.truncf %161 : vector<8x128xf32> to vector<8x128xbf16>
    %cst_44 = arith.constant dense<0.000000e+00> : vector<8x384xf32>
    %164 = tpu.matmul %163, %7, %cst_44 {dimension_numbers = #tpu.dot_dimension_numbers<[1], [0], [0], [1], [0, 0, 1, 1], [], []>} : vector<8x128xbf16>, vector<128x384xbf16>, vector<8x384xf32> -> vector<8x384xf32>
    %165 = vector.extract_strided_slice %162 {offsets = [0, 0], sizes = [8, 128], strides = [1, 1]} : vector<8x384xf32> to vector<8x128xf32>
    %166 = vector.extract_strided_slice %164 {offsets = [0, 0], sizes = [8, 128], strides = [1, 1]} : vector<8x384xf32> to vector<8x128xf32>
    %167 = arith.addf %165, %166 : vector<8x128xf32>
    %168 = vector.extract_strided_slice %162 {offsets = [0, 128], sizes = [8, 128], strides = [1, 1]} : vector<8x384xf32> to vector<8x128xf32>
    %169 = vector.extract_strided_slice %164 {offsets = [0, 128], sizes = [8, 128], strides = [1, 1]} : vector<8x384xf32> to vector<8x128xf32>
    %170 = arith.addf %168, %169 : vector<8x128xf32>
    %cst_45 = arith.constant 0.000000e+00 : f32
    %171 = vector.broadcast %cst_45 : f32 to vector<8x128xf32>
    %172 = arith.subf %171, %167 : vector<8x128xf32>
    %173 = math.exp %172 : vector<8x128xf32>
    %cst_46 = arith.constant 1.000000e+00 : f32
    %174 = vector.broadcast %cst_46 : f32 to vector<8x128xf32>
    %175 = arith.addf %174, %173 : vector<8x128xf32>
    %176 = tpu.reciprocal %175 {approx = true} : vector<8x128xf32> -> vector<8x128xf32>
    %cst_47 = arith.constant 0.000000e+00 : f32
    %177 = vector.broadcast %cst_47 : f32 to vector<8x128xf32>
    %178 = arith.subf %177, %170 : vector<8x128xf32>
    %179 = math.exp %178 : vector<8x128xf32>
    %cst_48 = arith.constant 1.000000e+00 : f32
    %180 = vector.broadcast %cst_48 : f32 to vector<8x128xf32>
    %181 = arith.addf %180, %179 : vector<8x128xf32>
    %182 = tpu.reciprocal %181 {approx = true} : vector<8x128xf32> -> vector<8x128xf32>
    %183 = vector.extract_strided_slice %162 {offsets = [0, 256], sizes = [8, 128], strides = [1, 1]} : vector<8x384xf32> to vector<8x128xf32>
    %184 = vector.extract_strided_slice %164 {offsets = [0, 256], sizes = [8, 128], strides = [1, 1]} : vector<8x384xf32> to vector<8x128xf32>
    %185 = arith.addf %184, %10 : vector<8x128xf32>
    %186 = arith.mulf %176, %185 : vector<8x128xf32>
    %187 = arith.addf %183, %186 : vector<8x128xf32>
    %188 = math.tanh %187 : vector<8x128xf32>
    %189 = arith.subf %161, %188 : vector<8x128xf32>
    %190 = arith.mulf %182, %189 : vector<8x128xf32>
    %191 = arith.addf %188, %190 : vector<8x128xf32>
    %c48 = arith.constant 48 : index
    %c0_49 = arith.constant 0 : index
    %192 = vector.load %arg10[%c48, %c0_49] : memref<64x384xf32, #tpu.memory_space<vmem>>, vector<8x384xf32>
    %193 = arith.truncf %191 : vector<8x128xf32> to vector<8x128xbf16>
    %cst_50 = arith.constant dense<0.000000e+00> : vector<8x384xf32>
    %194 = tpu.matmul %193, %7, %cst_50 {dimension_numbers = #tpu.dot_dimension_numbers<[1], [0], [0], [1], [0, 0, 1, 1], [], []>} : vector<8x128xbf16>, vector<128x384xbf16>, vector<8x384xf32> -> vector<8x384xf32>
    %195 = vector.extract_strided_slice %192 {offsets = [0, 0], sizes = [8, 128], strides = [1, 1]} : vector<8x384xf32> to vector<8x128xf32>
    %196 = vector.extract_strided_slice %194 {offsets = [0, 0], sizes = [8, 128], strides = [1, 1]} : vector<8x384xf32> to vector<8x128xf32>
    %197 = arith.addf %195, %196 : vector<8x128xf32>
    %198 = vector.extract_strided_slice %192 {offsets = [0, 128], sizes = [8, 128], strides = [1, 1]} : vector<8x384xf32> to vector<8x128xf32>
    %199 = vector.extract_strided_slice %194 {offsets = [0, 128], sizes = [8, 128], strides = [1, 1]} : vector<8x384xf32> to vector<8x128xf32>
    %200 = arith.addf %198, %199 : vector<8x128xf32>
    %cst_51 = arith.constant 0.000000e+00 : f32
    %201 = vector.broadcast %cst_51 : f32 to vector<8x128xf32>
    %202 = arith.subf %201, %197 : vector<8x128xf32>
    %203 = math.exp %202 : vector<8x128xf32>
    %cst_52 = arith.constant 1.000000e+00 : f32
    %204 = vector.broadcast %cst_52 : f32 to vector<8x128xf32>
    %205 = arith.addf %204, %203 : vector<8x128xf32>
    %206 = tpu.reciprocal %205 {approx = true} : vector<8x128xf32> -> vector<8x128xf32>
    %cst_53 = arith.constant 0.000000e+00 : f32
    %207 = vector.broadcast %cst_53 : f32 to vector<8x128xf32>
    %208 = arith.subf %207, %200 : vector<8x128xf32>
    %209 = math.exp %208 : vector<8x128xf32>
    %cst_54 = arith.constant 1.000000e+00 : f32
    %210 = vector.broadcast %cst_54 : f32 to vector<8x128xf32>
    %211 = arith.addf %210, %209 : vector<8x128xf32>
    %212 = tpu.reciprocal %211 {approx = true} : vector<8x128xf32> -> vector<8x128xf32>
    %213 = vector.extract_strided_slice %192 {offsets = [0, 256], sizes = [8, 128], strides = [1, 1]} : vector<8x384xf32> to vector<8x128xf32>
    %214 = vector.extract_strided_slice %194 {offsets = [0, 256], sizes = [8, 128], strides = [1, 1]} : vector<8x384xf32> to vector<8x128xf32>
    %215 = arith.addf %214, %10 : vector<8x128xf32>
    %216 = arith.mulf %206, %215 : vector<8x128xf32>
    %217 = arith.addf %213, %216 : vector<8x128xf32>
    %218 = math.tanh %217 : vector<8x128xf32>
    %219 = arith.subf %191, %218 : vector<8x128xf32>
    %220 = arith.mulf %212, %219 : vector<8x128xf32>
    %221 = arith.addf %218, %220 : vector<8x128xf32>
    %c56 = arith.constant 56 : index
    %c0_55 = arith.constant 0 : index
    %222 = vector.load %arg10[%c56, %c0_55] : memref<64x384xf32, #tpu.memory_space<vmem>>, vector<8x384xf32>
    %223 = arith.truncf %221 : vector<8x128xf32> to vector<8x128xbf16>
    %cst_56 = arith.constant dense<0.000000e+00> : vector<8x384xf32>
    %224 = tpu.matmul %223, %7, %cst_56 {dimension_numbers = #tpu.dot_dimension_numbers<[1], [0], [0], [1], [0, 0, 1, 1], [], []>} : vector<8x128xbf16>, vector<128x384xbf16>, vector<8x384xf32> -> vector<8x384xf32>
    %225 = vector.extract_strided_slice %222 {offsets = [0, 0], sizes = [8, 128], strides = [1, 1]} : vector<8x384xf32> to vector<8x128xf32>
    %226 = vector.extract_strided_slice %224 {offsets = [0, 0], sizes = [8, 128], strides = [1, 1]} : vector<8x384xf32> to vector<8x128xf32>
    %227 = arith.addf %225, %226 : vector<8x128xf32>
    %228 = vector.extract_strided_slice %222 {offsets = [0, 128], sizes = [8, 128], strides = [1, 1]} : vector<8x384xf32> to vector<8x128xf32>
    %229 = vector.extract_strided_slice %224 {offsets = [0, 128], sizes = [8, 128], strides = [1, 1]} : vector<8x384xf32> to vector<8x128xf32>
    %230 = arith.addf %228, %229 : vector<8x128xf32>
    %cst_57 = arith.constant 0.000000e+00 : f32
    %231 = vector.broadcast %cst_57 : f32 to vector<8x128xf32>
    %232 = arith.subf %231, %227 : vector<8x128xf32>
    %233 = math.exp %232 : vector<8x128xf32>
    %cst_58 = arith.constant 1.000000e+00 : f32
    %234 = vector.broadcast %cst_58 : f32 to vector<8x128xf32>
    %235 = arith.addf %234, %233 : vector<8x128xf32>
    %236 = tpu.reciprocal %235 {approx = true} : vector<8x128xf32> -> vector<8x128xf32>
    %cst_59 = arith.constant 0.000000e+00 : f32
    %237 = vector.broadcast %cst_59 : f32 to vector<8x128xf32>
    %238 = arith.subf %237, %230 : vector<8x128xf32>
    %239 = math.exp %238 : vector<8x128xf32>
    %cst_60 = arith.constant 1.000000e+00 : f32
    %240 = vector.broadcast %cst_60 : f32 to vector<8x128xf32>
    %241 = arith.addf %240, %239 : vector<8x128xf32>
    %242 = tpu.reciprocal %241 {approx = true} : vector<8x128xf32> -> vector<8x128xf32>
    %243 = vector.extract_strided_slice %222 {offsets = [0, 256], sizes = [8, 128], strides = [1, 1]} : vector<8x384xf32> to vector<8x128xf32>
    %244 = vector.extract_strided_slice %224 {offsets = [0, 256], sizes = [8, 128], strides = [1, 1]} : vector<8x384xf32> to vector<8x128xf32>
    %245 = arith.addf %244, %10 : vector<8x128xf32>
    %246 = arith.mulf %236, %245 : vector<8x128xf32>
    %247 = arith.addf %243, %246 : vector<8x128xf32>
    %248 = math.tanh %247 : vector<8x128xf32>
    %249 = arith.subf %221, %248 : vector<8x128xf32>
    %250 = arith.mulf %242, %249 : vector<8x128xf32>
    %251 = arith.addf %248, %250 : vector<8x128xf32>
    %252 = arith.truncf %251 : vector<8x128xf32> to vector<8x128xbf16>
    %c0_61 = arith.constant 0 : index
    %c0_62 = arith.constant 0 : index
    %253 = vector.load %arg5[%c0_61, %c0_62] : memref<128x128xbf16, #tpu.memory_space<vmem>>, vector<128x128xbf16>
    %cst_63 = arith.constant dense<0.000000e+00> : vector<8x128xf32>
    %254 = tpu.matmul %252, %253, %cst_63 {dimension_numbers = #tpu.dot_dimension_numbers<[1], [0], [0], [1], [0, 0, 1, 1], [], []>} : vector<8x128xbf16>, vector<128x128xbf16>, vector<8x128xf32> -> vector<8x128xf32>
    %c0_64 = arith.constant 0 : index
    %c0_65 = arith.constant 0 : index
    %255 = vector.load %arg6[%c0_64, %c0_65] : memref<1x128xf32, #tpu.memory_space<vmem>>, vector<1x128xf32>
    %256 = vector.broadcast %255 : vector<1x128xf32> to vector<8x128xf32>
    %257 = arith.addf %254, %256 : vector<8x128xf32>
    %cst_66 = arith.constant 0.000000e+00 : f32
    %258 = vector.broadcast %cst_66 : f32 to vector<8x128xf32>
    %259 = arith.maximumf %257, %258 : vector<8x128xf32>
    %260 = arith.truncf %259 : vector<8x128xf32> to vector<8x128xbf16>
    %c0_67 = arith.constant 0 : index
    %c0_68 = arith.constant 0 : index
    %261 = vector.load %arg7[%c0_67, %c0_68] : memref<128x8xbf16, #tpu.memory_space<vmem>>, vector<128x8xbf16>
    %cst_69 = arith.constant dense<0.000000e+00> : vector<8x8xf32>
    %262 = tpu.matmul %260, %261, %cst_69 {dimension_numbers = #tpu.dot_dimension_numbers<[1], [0], [0], [1], [0, 0, 1, 1], [], []>} : vector<8x128xbf16>, vector<128x8xbf16>, vector<8x8xf32> -> vector<8x8xf32>
    %c0_70 = arith.constant 0 : index
    %c0_71 = arith.constant 0 : index
    %263 = vector.load %arg8[%c0_70, %c0_71] : memref<1x8xf32, #tpu.memory_space<vmem>>, vector<1x8xf32>
    %264 = vector.broadcast %263 : vector<1x8xf32> to vector<8x8xf32>
    %265 = arith.addf %262, %264 : vector<8x8xf32>
    %266 = math.tanh %265 : vector<8x8xf32>
    %cst_72 = arith.constant 2.000000e+00 : f32
    %267 = vector.broadcast %cst_72 : f32 to vector<8x8xf32>
    %268 = arith.mulf %267, %266 : vector<8x8xf32>
    %c0_73 = arith.constant 0 : index
    %c0_74 = arith.constant 0 : index
    %269 = vector.load %arg9[%c0_73, %c0_74] : memref<8x8xf32, #tpu.memory_space<vmem>>, vector<8x8xf32>
    tpu.vector_store %arg9[%c0_73, %c0_74], %268 {strides = array<i32>} : memref<8x8xf32, #tpu.memory_space<vmem>>, vector<8x8xf32>,
    return
  }
}

</mosaic_0001>

<bundles_post_ra>
// kernel: actor_forward.1
= control target key start
LH: loop header
LB: loop body
LE: loop exit
PB: predicated region body
PF: predicated region fallthrough
CT: control target
= control target key end

     0   :  { %v2828_v2 = vmov 0   ;;  %vm99_vm0 = vcmask 130048   ;;  %v2830_v18 = vmov 0.0   ;;  %vm2065_vm1 = vmmov 0   ;;  %s2818_s0 = inlined_call_operand.vmem [shape: bf16[64,16], index: 0, kind: input, shape index: {}]   ;;  %s2819_s1 = inlined_call_operand.vmem [shape: bf16[16,384], index: 1, kind: input, shape index: {}]   ;;  %s2820_s2 = inlined_call_operand.vmem [shape: bf16[128,384], index: 2, kind: input, shape index: {}]   ;;  %s2821_s3 = inlined_call_operand.vmem [shape: f32[1,384], index: 3, kind: input, shape index: {}]   ;;  %s2822_s4 = inlined_call_operand.vmem [shape: f32[1,128], index: 4, kind: input, shape index: {}]   ;;  %s2823_s5 = inlined_call_operand.vmem [shape: bf16[128,128], index: 5, kind: input, shape index: {}]   ;;  %s2824_s6 = inlined_call_operand.vmem [shape: f32[1,128], index: 6, kind: input, shape index: {}]   ;;  %s2825_s7 = inlined_call_operand.vmem [shape: bf16[128,8], index: 7, kind: input, shape index: {}]   ;;  %s2826_s8 = inlined_call_operand.vmem [shape: f32[1,8], index: 8, kind: input, shape index: {}]   ;;  %s2827_s9 = inlined_call_operand.hbm [shape: f32[8,8], index: 9, kind: output, shape index: {}]  }
   0x1   :  { %v1882_v0 = vld [vmem:[%s2819_s1 + $0x4] ss:$12 sps:$4 sm:$0xff]   ;;  %v1884_v1 = vld [vmem:[%s2819_s1] ss:$12 sps:$4 sm:$0xff]   ;;  %144 = vmatprep.mubr.bf16.mxu0 %v2828_v2  ;;  %v2135_v5 = vld [vmem:[%s2820_s2 + $0xa8] ss:$12 sps:$4 sm:$0xff]  }
   0x2   :  { %126 = vmatprep.subr.bf16.mxu0 %v1882_v0  ;;  %v1885_v3 = vld [vmem:[%s2818_s0] sm:$0xff]   ;;  %v2130_v4 = vld [vmem:[%s2820_s2 + $0xac] ss:$12 sps:$4 sm:$0xff]   ;;  %v2149_v7 = vld [vmem:[%s2820_s2 + $0x90] ss:$12 sps:$4 sm:$0xff]  }
   0x3   :  { %127 = vmatpush1.bf16.msra.mxu0 %v1884_v1  ;;  %v2140_v6 = vld [vmem:[%s2820_s2 + $0x94] ss:$12 sps:$4 sm:$0xff]   ;;  %1670 = vmatprep.mubr.msk.bf16.mxu1 %vm99_vm0, %v1885_v3  ;;  %v2156_v8 = vld [vmem:[%s2820_s2 + $0x7c] ss:$12 sps:$4 sm:$0xff]   ;;  %v2165_v10 = vld [vmem:[%s2820_s2 + $0x78] ss:$12 sps:$4 sm:$0xff]  }
   0x4   :  { %444 = vmatprep.subr.bf16.mxu0 %v2130_v4  ;;  %v1892_v9 = vld [vmem:[%s2818_s0 + $0x8] sm:$0xff]   ;;  %v2171_v11 = vld [vmem:[%s2820_s2 + $0x64] ss:$12 sps:$4 sm:$0xff]   ;;  %v2209_v19 = vld [vmem:[%s2820_s2 + $0x34] ss:$12 sps:$4 sm:$0xff]  }
   0x5   :  { %v2178_v12 = vld [vmem:[%s2820_s2 + $0x60] ss:$12 sps:$4 sm:$0xff]   ;;  %v1909_v13 = vld [vmem:[%s2819_s1 + $0x8] ss:$12 sps:$4 sm:$0xff]   ;;  %v2196_v16 = vld [vmem:[%s2820_s2 + $0xb0] ss:$12 sps:$4 sm:$0xff]  }
   0x6   :  { %1522 = vmatmul.mubr.msk.bf16.vlgmr.msra.gmra.mxu0 %vm99_vm0, %v1885_v3  ;;  %v2188_v14 = vld [vmem:[%s2820_s2 + $0x4c] ss:$12 sps:$4 sm:$0xff]   ;;  %v1899_v15 = vld [vmem:[%s2818_s0 + $0x10] sm:$0xff]   ;;  %1668 = vmatprep.subr.bf16.mxu1 %v1909_v13  ;;  %v2233_v23 = vld [vmem:[%s2820_s2 + $0x1c] ss:$12 sps:$4 sm:$0xff]  }
   0x7   :  { %445 = vmatpush1.bf16.msra.mxu0 %v2135_v5  ;;  %154 = vmatprep.mubr.bf16.mxu0 %v2828_v2  ;;  %v2202_v17 = vld [vmem:[%s2820_s2 + $0x48] ss:$12 sps:$4 sm:$0xff]   ;;  %v2217_v20 = vld [vmem:[%s2820_s2 + $0x98] ss:$12 sps:$4 sm:$0xff]   ;;  %v2223_v21 = vld [vmem:[%s2820_s2 + $0x30] ss:$12 sps:$4 sm:$0xff]  }
   0x8   :  { %446 = vmatprep.subr.bf16.mxu0 %v2140_v6  ;;  %1669 = vmatpush3.bf16.msra.mxu1 %v1909_v13  ;;  %v1906_v22 = vld [vmem:[%s2818_s0 + $0x18] sm:$0xff]   ;;  %v2244_v25 = vld [vmem:[%s2820_s2 + $0x80] ss:$12 sps:$4 sm:$0xff]   ;;  %v2250_v26 = vld [vmem:[%s2820_s2 + $0x4] ss:$12 sps:$4 sm:$0xff]  }
   0x9   :  { %1678 = vmatprep.subr.bf16.mxu1 %v2830_v18  ;;  %v2239_v24 = vld [vmem:[%s2820_s2 + $0x18] ss:$12 sps:$4 sm:$0xff]   ;;  %v2259_v27 = vld [vmem:[%s2820_s2 + $0x68] ss:$12 sps:$4 sm:$0xff]   ;;  %v2264_v28 = vld [vmem:[%s2820_s2] ss:$12 sps:$4 sm:$0xff]  }
   0xa   :  { %v2276_v29 = vld [vmem:[%s2820_s2 + $0x50] ss:$12 sps:$4 sm:$0xff]  }
   0xb   :  { %447 = vmatpush1.bf16.msra.mxu0 %v2149_v7  ;;  %1671 = vmatmul.mubr.msk.bf16.vlgmr.msra.gmra.mxu1 %vm99_vm0, %v1892_v9 }
   0xc   :  { %448 = vmatprep.subr.bf16.mxu0 %v2156_v8  ;;  %1679 = vmatpush3.bf16.msra.mxu1 %v2196_v16 }
   0xd   :  { %1680 = vmatprep.subr.bf16.mxu1 %v2830_v18  ;;  %1674 = vmatprep.mubr.msk.bf16.mxu1 %vm99_vm0, %v1899_v15 }
   0xe   :  { %1523 = vmatmul.mubr.msk.bf16.gmra.mxu0 %vm99_vm0, %v1892_v9 }
   0xf   :  { %449 = vmatpush1.bf16.msra.mxu0 %v2165_v10  ;;  %164 = vmatprep.mubr.bf16.mxu0 %v2828_v2 }
  0x10   :  { %450 = vmatprep.subr.bf16.mxu0 %v2171_v11  ;;  %1681 = vmatpush3.bf16.msra.mxu1 %v2217_v20 }
  0x11   :  { %1682 = vmatprep.subr.bf16.mxu1 %v2830_v18 }
  0x13   :  { %451 = vmatpush1.bf16.msra.mxu0 %v2178_v12  ;;  %1675 = vmatmul.mubr.msk.bf16.gmra.mxu1 %vm99_vm0, %v1906_v22 }
  0x14   :  { %452 = vmatprep.subr.bf16.mxu0 %v2188_v14  ;;  %1683 = vmatpush3.bf16.msra.mxu1 %v2244_v25 }
  0x15   :  { %1684 = vmatprep.subr.bf16.mxu1 %v2830_v18  ;;  %1694 = vmatprep.mubr.msk.bf16.mxu1 %vm2065_vm1, %v2830_v18 }
  0x16   :  { %1524 = vmatmul.mubr.msk.bf16.gmra.mxu0 %vm99_vm0, %v1899_v15 }
  0x17   :  { %453 = vmatpush1.bf16.msra.mxu0 %v2202_v17  ;;  %174 = vmatprep.mubr.bf16.mxu0 %v2828_v2 }
  0x18   :  { %454 = vmatprep.subr.bf16.mxu0 %v2209_v19  ;;  %1685 = vmatpush3.bf16.msra.mxu1 %v2259_v27 }
  0x19   :  { %1686 = vmatprep.subr.bf16.mxu1 %v2830_v18 }
  0x1b   :  { %455 = vmatpush1.bf16.msra.mxu0 %v2223_v21 }
  0x1c   :  { %456 = vmatprep.subr.bf16.mxu0 %v2233_v23 }
  0x1e   :  { %1525 = vmatmul.mubr.msk.bf16.gmra.mxu0 %vm99_vm0, %v1906_v22 }
  0x1f   :  { %457 = vmatpush1.bf16.msra.mxu0 %v2239_v24  ;;  %476 = vmatprep.mubr.bf16.mxu0 %v2828_v2 }
  0x20   :  { %458 = vmatprep.subr.bf16.mxu0 %v2250_v26 }
  0x23   :  { %459 = vmatpush1.bf16.msra.mxu0 %v2264_v28 }
  0x24   :  { %548 = vmatprep.subr.bf16.mxu0 %v2130_v4 }
  0x25   :  { %14 = vsyncpa [#allocation4], 0  ;;  %1687 = vmatpush3.bf16.msra.mxu1 %v2276_v29  ;;  %v2289_v30 = vld [vmem:[%s2820_s2 + $0x38] ss:$12 sps:$4 sm:$0xff]   ;;  %v2299_v31 = vld [vmem:[%s2820_s2 + $0x20] ss:$12 sps:$4 sm:$0xff]   ;;  %v48_v33 = vlaneseq }
  0x26   :  { %477 = vmatmul.mubr.bf16.vlgmr.msra.gmra.mxu0 %v2828_v2  ;;  %1688 = vmatprep.subr.bf16.mxu1 %v2830_v18  ;;  %v2308_v32 = vld [vmem:[%s2820_s2 + $0x8] ss:$12 sps:$4 sm:$0xff]   ;;  %v46_v36 = vld [vmem:[%s2821_s3] sm:$0x7]  ;;  %vm1499_vm2 = vcmask 64512  }
  0x27   :  { %549 = vmatpush1.bf16.msra.mxu0 %v2135_v5  ;;  %580 = vmatprep.mubr.bf16.mxu0 %v2828_v2  ;;  %v49_v34 = vshrl.u32 %v48_v33, 7 }
  0x28   :  { %550 = vmatprep.subr.bf16.mxu0 %v2140_v6 }
  0x29   :  { %1689 = vmatpush3.bf16.msra.mxu1 %v2289_v30  ;;  %v50_v35 = vsub.s32 0, %v49_v34  ;;  %v54_v38 = vsub.s32 1, %v49_v34  ;;  %v58_v47 = vsub.s32 2, %v49_v34 }
  0x2a   :  { %1690 = vmatprep.subr.bf16.mxu1 %v2830_v18 }
  0x2b   :  { %551 = vmatpush1.bf16.msra.mxu0 %v2149_v7  ;;  %v51_v40 = vrot.slane %v46_v36, %v50_v35  ;;  %v55_v42 = vrot.slane %v46_v36, %v54_v38  ;;  %v59_v52 = vrot.slane %v46_v36, %v58_v47 }
  0x2c   :  { %552 = vmatprep.subr.bf16.mxu0 %v2156_v8 }
  0x2d   :  { %1691 = vmatpush3.bf16.msra.mxu1 %v2299_v31 }
  0x2e   :  { %1692 = vmatprep.subr.bf16.mxu1 %v2830_v18 }
  0x2f   :  { %553 = vmatpush1.bf16.msra.mxu0 %v2165_v10 }
  0x30   :  { %554 = vmatprep.subr.bf16.mxu0 %v2171_v11 }
  0x31   :  { %1693 = vmatpush3.bf16.msra.mxu1 %v2308_v32 }
  0x32   :  { %1698 = vmatprep.subr.bf16.mxu1 %v2830_v18 }
  0x33   :  { %555 = vmatpush1.bf16.msra.mxu0 %v2178_v12 }
  0x34   :  { %556 = vmatprep.subr.bf16.mxu0 %v2188_v14  ;;  %1695 = vmatmul.mubr.bf16.vlgmr.msra.gmra.mxu1 %v2828_v2 }
  0x35   :  { %1699 = vmatpush3.bf16.msra.mxu1 %v2196_v16  ;;  %1714 = vmatprep.mubr.msk.bf16.mxu1 %vm2065_vm1, %v2830_v18 }
  0x36   :  { %1700 = vmatprep.subr.bf16.mxu1 %v2830_v18 }
  0x37   :  { %557 = vmatpush1.bf16.msra.mxu0 %v2202_v17 }
  0x38   :  { %558 = vmatprep.subr.bf16.mxu0 %v2209_v19 }
  0x39   :  { %1701 = vmatpush3.bf16.msra.mxu1 %v2217_v20 }
  0x3a   :  { %1702 = vmatprep.subr.bf16.mxu1 %v2830_v18 }
  0x3b   :  { %559 = vmatpush1.bf16.msra.mxu0 %v2223_v21 }
  0x3c   :  { %560 = vmatprep.subr.bf16.mxu0 %v2233_v23 }
  0x3d   :  { %1703 = vmatpush3.bf16.msra.mxu1 %v2244_v25 }
  0x3e   :  { %1704 = vmatprep.subr.bf16.mxu1 %v2830_v18 }
  0x3f   :  { %561 = vmatpush1.bf16.msra.mxu0 %v2239_v24 }
  0x40   :  { %562 = vmatprep.subr.bf16.mxu0 %v2250_v26 }
  0x41   :  { %1705 = vmatpush3.bf16.msra.mxu1 %v2259_v27 }
  0x42   :  { %1706 = vmatprep.subr.bf16.mxu1 %v2830_v18 }
  0x43   :  { %563 = vmatpush1.bf16.msra.mxu0 %v2264_v28 }
  0x44   :  { %652 = vmatprep.subr.bf16.mxu0 %v2130_v4 }
  0x45   :  { %1707 = vmatpush3.bf16.msra.mxu1 %v2276_v29 }
  0x46   :  { %1708 = vmatprep.subr.bf16.mxu1 %v2830_v18 }
  0x49   :  { %1709 = vmatpush3.bf16.msra.mxu1 %v2289_v30 }
  0x4a   :  { %1710 = vmatprep.subr.bf16.mxu1 %v2830_v18 }
  0x4d   :  { %1711 = vmatpush3.bf16.msra.mxu1 %v2299_v31 }
  0x4e   :  { %1712 = vmatprep.subr.bf16.mxu1 %v2830_v18 }
  0x51   :  { %1713 = vmatpush3.bf16.msra.mxu1 %v2308_v32 }
  0x52   :  { %1718 = vmatprep.subr.bf16.mxu1 %v2830_v18 }
  0xc6   :  { %v146_v37 = vpop.f32.mrf.mxu0 }
  0xc8   :  { %v148_v39 = vpop.f32.mrf.mxu0 }
  0xc9   :  { %v149_v18 = vadd.f32 %v148_v39, %v55_v42 }
  0xca   :  { %v150_v41 = vpop.f32.mrf.mxu0 }
  0xcb   :  { %v2347_v43 = vadd.f32 %v150_v41, %v51_v40  ;;  %v1672_v56 = vpop.f32.mrf.mxu1 }
  0xcc   :  { %v152_v44 = vpop.f32.mrf.mxu0  ;;  %v2359_v58 = vadd.f32 %v1672_v56, %v59_v52 }
  0xcd   :  { %v2349_v45 = vadd.f32 %v152_v44, %v55_v42  ;;  %v219_v60 = vpop.f32.mrf.mxu1 }
  0xce   :  { %v156_v46 = vpop.f32.mrf.mxu0 }
  0xcf   :  { %v2351_v48 = vadd.f32 %v156_v46, %v51_v40  ;;  %v1673_v63 = vpop.f32.mrf.mxu1 }
  0xd0   :  { %v158_v49 = vpop.f32.mrf.mxu0  ;;  %v2365_v1 = vadd.f32 %v1673_v63, %v59_v52  ;;  %v147_v63 = vadd.f32 %v146_v37, %v51_v40 }
  0xd1   :  { %v2353_v50 = vadd.f32 %v158_v49, %v55_v42  ;;  %v222_v9 = vpop.f32.mrf.mxu1 }
  0xd2   :  { %v160_v51 = vpop.f32.mrf.mxu0  ;;  %v2369_v15 = vadd.f32 %v222_v9, %v59_v52 }
  0xd3   :  { %v2355_v53 = vadd.f32 %v160_v51, %v51_v40  ;;  %v1676_v33 = vpop.f32.mrf.mxu1 }
  0xd4   :  { %v162_v54 = vpop.f32.mrf.mxu0  ;;  %v2373_v35 = vadd.f32 %v1676_v33, %v59_v52 }
  0xd5   :  { %v2357_v55 = vadd.f32 %v162_v54, %v55_v42  ;;  %v235_v38 = vpop.f32.mrf.mxu1 }
  0xd6   :  { %v166_v57 = vpop.f32.mrf.mxu0  ;;  %2832 = vst [vmem:[#allocation6_spill] sm:$0xff] %v2373_v35  ;;  %v2377_v44 = vadd.f32 %v235_v38, %v59_v52 }
  0xd7   :  { %v2361_v59 = vadd.f32 %v166_v57, %v51_v40  ;;  %v1677_v47 = vpop.f32.mrf.mxu1 }
  0xd8   :  { %v168_v61 = vpop.f32.mrf.mxu0  ;;  %v2381_v51 = vadd.f32 %v1677_v47, %v59_v52 }
  0xd9   :  { %v2363_v62 = vadd.f32 %v168_v61, %v55_v42  ;;  %v238_v56 = vpop.f32.mrf.mxu1 }
  0xda   :  { %v170_v0 = vpop.f32.mrf.mxu0  ;;  %2835 = vst [vmem:[#allocation9_spill] sm:$0xff] %v2381_v51  ;;  %v2385_v61 = vadd.f32 %v238_v56, %v59_v52 }
  0xdb   :  { %v2367_v3 = vadd.f32 %v170_v0, %v51_v40 }
  0xdc   :  { %v172_v13 = vpop.f32.mrf.mxu0 }
  0xdd   :  { %v2371_v22 = vadd.f32 %v172_v13, %v55_v42 }
  0xde   :  { %v176_v34 = vpop.f32.mrf.mxu0 }
  0xdf   :  { %v2375_v36 = vadd.f32 %v176_v34, %v51_v40 }
  0xe0   :  { %v178_v41 = vpop.f32.mrf.mxu0 }
  0xe1   :  { %2833 = vst [vmem:[#allocation7_spill] sm:$0xff] %v2375_v36  ;;  %v2379_v46 = vadd.f32 %v178_v41, %v55_v42 }
  0xe2   :  { %v180_v49 = vpop.f32.mrf.mxu0 }
  0xe3   :  { %2834 = vst [vmem:[#allocation8_spill] sm:$0xff] %v2379_v46  ;;  %v2383_v54 = vadd.f32 %v180_v49, %v51_v40  ;;  %v2392_v40 = vld [vmem:[%s2822_s4] ss:$0 sm:$0xff] }
  0xe4   :  { %v182_v57 = vpop.f32.mrf.mxu0 }
  0xe5   :  { %2836 = vst [vmem:[#allocation10_spill] sm:$0xff] %v2383_v54  ;;  %v2387_v0 = vadd.f32 %v182_v57, %v55_v42 }
  0xe6   :  { %v478_v9 = vpop.f32.mrf.mxu0 }
  0xe7   :  { %v525_v13 = vadd.f32 %v478_v9, %v147_v63 }
  0xe8   :  { %v480_v33 = vpop.f32.mrf.mxu0 }
  0xe9   :  { %v527_v34 = vsub.f32 0.0, %v525_v13  ;;  %v526_v47 = vadd.f32 %v480_v33, %v149_v18  ;;  %v220_v18 = vadd.f32 %v219_v60, %v59_v52  ;;  %v2837_v52 = vmov 0.0  }
  0xea   :  { %v482_v38 = vpop.f32.mrf.mxu0  ;;  %v2838_v60 = vmov 0  }
  0xeb   :  { %v528_v41 = vmul.f32 1.442695, %v527_v34  ;;  %v532_v51 = vsub.f32 0.0, %v526_v47 }
  0xec   :  { %v483_v2 = vpop.f32.mrf.mxu0 }
  0xed   :  { %1938 = vpow2.f32 %v528_v41  ;;  %v533_v35 = vmul.f32 1.442695, %v532_v51 }
  0xef   :  { %1940 = vpow2.f32 %v533_v35 }
  0xf4   :  { %v519_v49 = vpop.f32.mrf.mxu1 }
  0xf5   :  { %v537_v2 = vadd.f32 %v2392_v40, %v519_v49 }
  0xf6   :  { %v1696_v54 = vpop.f32.mrf.mxu1 }
  0xf8   :  { %v522_v46 = vpop.f32.mrf.mxu1 }
  0xfa   :  { %v1939_v56 = vpop.eup %1938  ;;  %v1697_v37 = vpop.f32.mrf.mxu1 }
  0xfb   :  { %v530_v36 = vadd.f32 1.0, %v1939_v56 }
  0xfc   :  { %v1941_v57 = vpop.eup %1940 }
  0xfd   :  { %1942 = vrcp.f32 %v530_v36  ;;  %v535_v63 = vadd.f32 1.0, %v1941_v57 }
 0x10a   :  { %v1943_v39 = vpop.eup %1942 }
 0x10b   :  { %v538_v42 = vmul.f32 %v1943_v39, %v537_v2 }
 0x10d   :  { %v539_v54 = vadd.f32 %v538_v42, %v220_v18 }
 0x10f   :  { %1944 = vtanh.f32 %v539_v54 }
 0x110   :  { %1946 = vrcp.f32 %v535_v63 }
 0x11c   :  { %v1945_v46 = vpop.eup %1944 }
 0x11d   :  { %v541_v51 = vsub.f32 0.0, %v1945_v46  ;;  %v1947_v9 = vpop.eup %1946 }
 0x11f   :  { %v542_v35 = vmul.f32 %v1947_v9, %v541_v51 }
 0x121   :  { %v2395_v36 = vadd.f32 %v1945_v46, %v542_v35 }
 0x123   :  { %v547_v13 = vpack.c.bf16 %v2395_v36, %v2395_v36 }
 0x125   :  { %581 = vmatmul.mubr.bf16.vlgmr.msra.gmra.mxu0 %v547_v13  ;;  %1715 = vmatmul.mubr.bf16.vlgmr.msra.gmra.mxu1 %v547_v13 }
 0x126   :  { %653 = vmatpush1.bf16.msra.mxu0 %v2135_v5  ;;  %1719 = vmatpush3.bf16.msra.mxu1 %v2196_v16 }
 0x127   :  { %654 = vmatprep.subr.bf16.mxu0 %v2140_v6  ;;  %1720 = vmatprep.subr.bf16.mxu1 %v2837_v52 }
 0x128   :  { %684 = vmatprep.mubr.bf16.mxu0 %v2838_v60  ;;  %1734 = vmatprep.mubr.msk.bf16.mxu1 %vm2065_vm1, %v2837_v52 }
 0x12a   :  { %655 = vmatpush1.bf16.msra.mxu0 %v2149_v7  ;;  %1721 = vmatpush3.bf16.msra.mxu1 %v2217_v20 }
 0x12b   :  { %656 = vmatprep.subr.bf16.mxu0 %v2156_v8  ;;  %1722 = vmatprep.subr.bf16.mxu1 %v2837_v52 }
 0x12e   :  { %657 = vmatpush1.bf16.msra.mxu0 %v2165_v10  ;;  %1723 = vmatpush3.bf16.msra.mxu1 %v2244_v25 }
 0x12f   :  { %658 = vmatprep.subr.bf16.mxu0 %v2171_v11  ;;  %1724 = vmatprep.subr.bf16.mxu1 %v2837_v52 }
 0x132   :  { %659 = vmatpush1.bf16.msra.mxu0 %v2178_v12  ;;  %1725 = vmatpush3.bf16.msra.mxu1 %v2259_v27 }
 0x133   :  { %660 = vmatprep.subr.bf16.mxu0 %v2188_v14  ;;  %1726 = vmatprep.subr.bf16.mxu1 %v2837_v52 }
 0x136   :  { %661 = vmatpush1.bf16.msra.mxu0 %v2202_v17  ;;  %1727 = vmatpush3.bf16.msra.mxu1 %v2276_v29 }
 0x137   :  { %662 = vmatprep.subr.bf16.mxu0 %v2209_v19  ;;  %1728 = vmatprep.subr.bf16.mxu1 %v2837_v52 }
 0x13a   :  { %663 = vmatpush1.bf16.msra.mxu0 %v2223_v21  ;;  %1729 = vmatpush3.bf16.msra.mxu1 %v2289_v30 }
 0x13b   :  { %664 = vmatprep.subr.bf16.mxu0 %v2233_v23  ;;  %1730 = vmatprep.subr.bf16.mxu1 %v2837_v52 }
 0x13e   :  { %665 = vmatpush1.bf16.msra.mxu0 %v2239_v24  ;;  %1731 = vmatpush3.bf16.msra.mxu1 %v2299_v31 }
 0x13f   :  { %666 = vmatprep.subr.bf16.mxu0 %v2250_v26  ;;  %1732 = vmatprep.subr.bf16.mxu1 %v2837_v52 }
 0x142   :  { %667 = vmatpush1.bf16.msra.mxu0 %v2264_v28  ;;  %1733 = vmatpush3.bf16.msra.mxu1 %v2308_v32 }
 0x143   :  { %756 = vmatprep.subr.bf16.mxu0 %v2130_v4  ;;  %1738 = vmatprep.subr.bf16.mxu1 %v2837_v52 }
 0x1e5   :  { %v582_v33 = vpop.f32.mrf.mxu0  ;;  %v623_v34 = vpop.f32.mrf.mxu1 }
 0x1e6   :  { %v629_v38 = vadd.f32 %v582_v33, %v2347_v43  ;;  %v641_v43 = vadd.f32 %v2392_v40, %v623_v34 }
 0x1e7   :  { %v584_v41 = vpop.f32.mrf.mxu0  ;;  %v1716_v47 = vpop.f32.mrf.mxu1 }
 0x1e8   :  { %v631_v49 = vsub.f32 0.0, %v629_v38  ;;  %v630_v18 = vadd.f32 %v584_v41, %v2349_v45 }
 0x1e9   :  { %v586_v56 = vpop.f32.mrf.mxu0  ;;  %v626_v37 = vpop.f32.mrf.mxu1 }
 0x1ea   :  { %v632_v2 = vmul.f32 1.442695, %v631_v49  ;;  %v636_v42 = vsub.f32 0.0, %v630_v18 }
 0x1eb   :  { %v587_v57 = vpop.f32.mrf.mxu0  ;;  %v1717_v39 = vpop.f32.mrf.mxu1 }
 0x1ec   :  { %1948 = vpow2.f32 %v632_v2  ;;  %v637_v63 = vmul.f32 1.442695, %v636_v42 }
 0x1ee   :  { %1950 = vpow2.f32 %v637_v63 }
 0x1f9   :  { %v1949_v54 = vpop.eup %1948 }
 0x1fa   :  { %v634_v46 = vadd.f32 1.0, %v1949_v54 }
 0x1fb   :  { %v1951_v51 = vpop.eup %1950 }
 0x1fc   :  { %1952 = vrcp.f32 %v634_v46  ;;  %v639_v33 = vadd.f32 1.0, %v1951_v51 }
 0x209   :  { %v1953_v9 = vpop.eup %1952 }
 0x20a   :  { %v642_v35 = vmul.f32 %v1953_v9, %v641_v43 }
 0x20c   :  { %v643_v13 = vadd.f32 %v642_v35, %v2369_v15 }
 0x20e   :  { %1954 = vtanh.f32 %v643_v13 }
 0x20f   :  { %1956 = vrcp.f32 %v639_v33 }
 0x21b   :  { %v1955_v38 = vpop.eup %1954 }
 0x21c   :  { %v645_v47 = vsub.f32 %v2395_v36, %v1955_v38  ;;  %v1957_v45 = vpop.eup %1956 }
 0x21e   :  { %v646_v41 = vmul.f32 %v1957_v45, %v645_v47 }
 0x220   :  { %v2439_v49 = vadd.f32 %v1955_v38, %v646_v41 }
 0x222   :  { %v651_v56 = vpack.c.bf16 %v2439_v49, %v2439_v49 }
 0x224   :  { %685 = vmatmul.mubr.bf16.vlgmr.msra.gmra.mxu0 %v651_v56  ;;  %1735 = vmatmul.mubr.bf16.vlgmr.msra.gmra.mxu1 %v651_v56 }
 0x225   :  { %757 = vmatpush1.bf16.msra.mxu0 %v2135_v5  ;;  %1739 = vmatpush3.bf16.msra.mxu1 %v2196_v16 }
 0x226   :  { %758 = vmatprep.subr.bf16.mxu0 %v2140_v6  ;;  %1740 = vmatprep.subr.bf16.mxu1 %v2837_v52 }
 0x227   :  { %788 = vmatprep.mubr.bf16.mxu0 %v2838_v60  ;;  %1754 = vmatprep.mubr.msk.bf16.mxu1 %vm2065_vm1, %v2837_v52 }
 0x229   :  { %759 = vmatpush1.bf16.msra.mxu0 %v2149_v7  ;;  %1741 = vmatpush3.bf16.msra.mxu1 %v2217_v20 }
 0x22a   :  { %760 = vmatprep.subr.bf16.mxu0 %v2156_v8  ;;  %1742 = vmatprep.subr.bf16.mxu1 %v2837_v52 }
 0x22d   :  { %761 = vmatpush1.bf16.msra.mxu0 %v2165_v10  ;;  %1743 = vmatpush3.bf16.msra.mxu1 %v2244_v25 }
 0x22e   :  { %762 = vmatprep.subr.bf16.mxu0 %v2171_v11  ;;  %1744 = vmatprep.subr.bf16.mxu1 %v2837_v52 }
 0x231   :  { %763 = vmatpush1.bf16.msra.mxu0 %v2178_v12  ;;  %1745 = vmatpush3.bf16.msra.mxu1 %v2259_v27 }
 0x232   :  { %764 = vmatprep.subr.bf16.mxu0 %v2188_v14  ;;  %1746 = vmatprep.subr.bf16.mxu1 %v2837_v52 }
 0x235   :  { %765 = vmatpush1.bf16.msra.mxu0 %v2202_v17  ;;  %1747 = vmatpush3.bf16.msra.mxu1 %v2276_v29 }
 0x236   :  { %766 = vmatprep.subr.bf16.mxu0 %v2209_v19  ;;  %1748 = vmatprep.subr.bf16.mxu1 %v2837_v52 }
 0x239   :  { %767 = vmatpush1.bf16.msra.mxu0 %v2223_v21  ;;  %1749 = vmatpush3.bf16.msra.mxu1 %v2289_v30 }
 0x23a   :  { %768 = vmatprep.subr.bf16.mxu0 %v2233_v23  ;;  %1750 = vmatprep.subr.bf16.mxu1 %v2837_v52 }
 0x23d   :  { %769 = vmatpush1.bf16.msra.mxu0 %v2239_v24  ;;  %1751 = vmatpush3.bf16.msra.mxu1 %v2299_v31 }
 0x23e   :  { %770 = vmatprep.subr.bf16.mxu0 %v2250_v26  ;;  %1752 = vmatprep.subr.bf16.mxu1 %v2837_v52 }
 0x241   :  { %771 = vmatpush1.bf16.msra.mxu0 %v2264_v28  ;;  %1753 = vmatpush3.bf16.msra.mxu1 %v2308_v32 }
 0x242   :  { %860 = vmatprep.subr.bf16.mxu0 %v2130_v4  ;;  %1758 = vmatprep.subr.bf16.mxu1 %v2837_v52 }
 0x2e4   :  { %v686_v15 = vpop.f32.mrf.mxu0  ;;  %v727_v36 = vpop.f32.mrf.mxu1 }
 0x2e5   :  { %v733_v34 = vadd.f32 %v686_v15, %v2351_v48  ;;  %v745_v48 = vadd.f32 %v2392_v40, %v727_v36 }
 0x2e6   :  { %v688_v37 = vpop.f32.mrf.mxu0  ;;  %v1736_v2 = vpop.f32.mrf.mxu1 }
 0x2e7   :  { %v735_v57 = vsub.f32 0.0, %v733_v34  ;;  %v734_v46 = vadd.f32 %v688_v37, %v2353_v50 }
 0x2e8   :  { %v690_v39 = vpop.f32.mrf.mxu0  ;;  %v730_v18 = vpop.f32.mrf.mxu1 }
 0x2e9   :  { %v736_v42 = vmul.f32 1.442695, %v735_v57  ;;  %v740_v51 = vsub.f32 0.0, %v734_v46 }
 0x2ea   :  { %v691_v63 = vpop.f32.mrf.mxu0  ;;  %v1737_v54 = vpop.f32.mrf.mxu1 }
 0x2eb   :  { %1958 = vpow2.f32 %v736_v42  ;;  %v741_v43 = vmul.f32 1.442695, %v740_v51 }
 0x2ed   :  { %1960 = vpow2.f32 %v741_v43 }
 0x2f8   :  { %v1959_v9 = vpop.eup %1958 }
 0x2f9   :  { %v738_v35 = vadd.f32 1.0, %v1959_v9 }
 0x2fa   :  { %v1961_v13 = vpop.eup %1960 }
 0x2fb   :  { %1962 = vrcp.f32 %v738_v35  ;;  %v743_v45 = vadd.f32 1.0, %v1961_v13 }
 0x308   :  { %v1963_v33 = vpop.eup %1962 }
 0x309   :  { %v746_v38 = vmul.f32 %v1963_v33, %v745_v48 }
 0x30b   :  { %v747_v47 = vadd.f32 %v746_v38, %v2359_v58 }
 0x30d   :  { %1964 = vtanh.f32 %v747_v47 }
 0x30e   :  { %1966 = vrcp.f32 %v743_v45 }
 0x31a   :  { %v1965_v41 = vpop.eup %1964 }
 0x31b   :  { %v749_v56 = vsub.f32 %v2439_v49, %v1965_v41  ;;  %v1967_v50 = vpop.eup %1966 }
 0x31d   :  { %v750_v15 = vmul.f32 %v1967_v50, %v749_v56 }
 0x31f   :  { %v2483_v34 = vadd.f32 %v1965_v41, %v750_v15 }
 0x321   :  { %v755_v37 = vpack.c.bf16 %v2483_v34, %v2483_v34 }
 0x323   :  { %789 = vmatmul.mubr.bf16.vlgmr.msra.gmra.mxu0 %v755_v37  ;;  %1755 = vmatmul.mubr.bf16.vlgmr.msra.gmra.mxu1 %v755_v37 }
 0x324   :  { %861 = vmatpush1.bf16.msra.mxu0 %v2135_v5  ;;  %1759 = vmatpush3.bf16.msra.mxu1 %v2196_v16 }
 0x325   :  { %862 = vmatprep.subr.bf16.mxu0 %v2140_v6  ;;  %1760 = vmatprep.subr.bf16.mxu1 %v2837_v52 }
 0x326   :  { %892 = vmatprep.mubr.bf16.mxu0 %v2838_v60  ;;  %1774 = vmatprep.mubr.msk.bf16.mxu1 %vm2065_vm1, %v2837_v52 }
 0x328   :  { %863 = vmatpush1.bf16.msra.mxu0 %v2149_v7  ;;  %1761 = vmatpush3.bf16.msra.mxu1 %v2217_v20 }
 0x329   :  { %864 = vmatprep.subr.bf16.mxu0 %v2156_v8  ;;  %1762 = vmatprep.subr.bf16.mxu1 %v2837_v52 }
 0x32c   :  { %865 = vmatpush1.bf16.msra.mxu0 %v2165_v10  ;;  %1763 = vmatpush3.bf16.msra.mxu1 %v2244_v25 }
 0x32d   :  { %866 = vmatprep.subr.bf16.mxu0 %v2171_v11  ;;  %1764 = vmatprep.subr.bf16.mxu1 %v2837_v52 }
 0x330   :  { %867 = vmatpush1.bf16.msra.mxu0 %v2178_v12  ;;  %1765 = vmatpush3.bf16.msra.mxu1 %v2259_v27 }
 0x331   :  { %868 = vmatprep.subr.bf16.mxu0 %v2188_v14  ;;  %1766 = vmatprep.subr.bf16.mxu1 %v2837_v52 }
 0x334   :  { %869 = vmatpush1.bf16.msra.mxu0 %v2202_v17  ;;  %1767 = vmatpush3.bf16.msra.mxu1 %v2276_v29 }
 0x335   :  { %870 = vmatprep.subr.bf16.mxu0 %v2209_v19  ;;  %1768 = vmatprep.subr.bf16.mxu1 %v2837_v52 }
 0x338   :  { %871 = vmatpush1.bf16.msra.mxu0 %v2223_v21  ;;  %1769 = vmatpush3.bf16.msra.mxu1 %v2289_v30 }
 0x339   :  { %872 = vmatprep.subr.bf16.mxu0 %v2233_v23  ;;  %1770 = vmatprep.subr.bf16.mxu1 %v2837_v52 }
 0x33c   :  { %873 = vmatpush1.bf16.msra.mxu0 %v2239_v24  ;;  %1771 = vmatpush3.bf16.msra.mxu1 %v2299_v31 }
 0x33d   :  { %874 = vmatprep.subr.bf16.mxu0 %v2250_v26  ;;  %1772 = vmatprep.subr.bf16.mxu1 %v2837_v52 }
 0x340   :  { %875 = vmatpush1.bf16.msra.mxu0 %v2264_v28  ;;  %1773 = vmatpush3.bf16.msra.mxu1 %v2308_v32 }
 0x341   :  { %964 = vmatprep.subr.bf16.mxu0 %v2130_v4  ;;  %1778 = vmatprep.subr.bf16.mxu1 %v2837_v52 }
 0x3e3   :  { %v790_v58 = vpop.f32.mrf.mxu0  ;;  %v831_v49 = vpop.f32.mrf.mxu1 }
 0x3e4   :  { %v837_v36 = vadd.f32 %v790_v58, %v2355_v53  ;;  %v849_v53 = vadd.f32 %v2392_v40, %v831_v49 }
 0x3e5   :  { %v792_v2 = vpop.f32.mrf.mxu0  ;;  %v1756_v57 = vpop.f32.mrf.mxu1 }
 0x3e6   :  { %v839_v39 = vsub.f32 0.0, %v837_v36  ;;  %v838_v51 = vadd.f32 %v792_v2, %v2357_v55 }
 0x3e7   :  { %v794_v18 = vpop.f32.mrf.mxu0  ;;  %v834_v42 = vpop.f32.mrf.mxu1 }
 0x3e8   :  { %v840_v63 = vmul.f32 1.442695, %v839_v39  ;;  %v844_v43 = vsub.f32 0.0, %v838_v51 }
 0x3e9   :  { %v795_v54 = vpop.f32.mrf.mxu0  ;;  %v1757_v46 = vpop.f32.mrf.mxu1 }
 0x3ea   :  { %1968 = vpow2.f32 %v840_v63  ;;  %v845_v9 = vmul.f32 1.442695, %v844_v43 }
 0x3ec   :  { %1970 = vpow2.f32 %v845_v9 }
 0x3f7   :  { %v1969_v4 = vpop.eup %1968 }
 0x3f8   :  { %v842_v35 = vadd.f32 1.0, %v1969_v4  ;;  %v2583_v4 = vld [vmem:[%s2820_s2 + $0xa8] ss:$12 sps:$4 sm:$0xff]  }
 0x3f9   :  { %v1971_v13 = vpop.eup %1970 }
 0x3fa   :  { %1972 = vrcp.f32 %v842_v35  ;;  %v847_v47 = vadd.f32 1.0, %v1971_v13  ;;  %v2600_v35 = vld [vmem:[%s2820_s2 + $0x90] ss:$12 sps:$4 sm:$0xff]   ;;  %v2614_v13 = vld [vmem:[%s2820_s2 + $0x78] ss:$12 sps:$4 sm:$0xff]  }
 0x407   :  { %v1973_v48 = vpop.eup %1972 }
 0x408   :  { %v850_v33 = vmul.f32 %v1973_v48, %v849_v53  ;;  %v2628_v53 = vld [vmem:[%s2820_s2 + $0x60] ss:$12 sps:$4 sm:$0xff]   ;;  %v2642_v48 = vld [vmem:[%s2820_s2 + $0x48] ss:$12 sps:$4 sm:$0xff]  }
 0x40a   :  { %v851_v38 = vadd.f32 %v850_v33, %v2365_v1 }
 0x40c   :  { %1974 = vtanh.f32 %v851_v38 }
 0x40d   :  { %1976 = vrcp.f32 %v847_v47 }
 0x419   :  { %v1975_v45 = vpop.eup %1974 }
 0x41a   :  { %v853_v41 = vsub.f32 %v2483_v34, %v1975_v45  ;;  %v1977_v55 = vpop.eup %1976 }
 0x41c   :  { %v854_v56 = vmul.f32 %v1977_v55, %v853_v41 }
 0x41e   :  { %v2527_v50 = vadd.f32 %v1975_v45, %v854_v56 }
 0x420   :  { %v859_v15 = vpack.c.bf16 %v2527_v50, %v2527_v50 }
 0x422   :  { %893 = vmatmul.mubr.bf16.vlgmr.msra.gmra.mxu0 %v859_v15  ;;  %1775 = vmatmul.mubr.bf16.vlgmr.msra.gmra.mxu1 %v859_v15 }
 0x423   :  { %965 = vmatpush1.bf16.msra.mxu0 %v2135_v5  ;;  %1779 = vmatpush3.bf16.msra.mxu1 %v2196_v16  ;;  %v2567_v5 = vld [vmem:[%s2820_s2 + $0xac] ss:$12 sps:$4 sm:$0xff]  }
 0x424   :  { %966 = vmatprep.subr.bf16.mxu0 %v2140_v6  ;;  %1780 = vmatprep.subr.bf16.mxu1 %v2837_v52 }
 0x425   :  { %996 = vmatprep.mubr.bf16.mxu0 %v2838_v60  ;;  %1794 = vmatprep.mubr.msk.bf16.mxu1 %vm2065_vm1, %v2837_v52 }
 0x427   :  { %967 = vmatpush1.bf16.msra.mxu0 %v2149_v7  ;;  %1781 = vmatpush3.bf16.msra.mxu1 %v2217_v20 }
 0x428   :  { %968 = vmatprep.subr.bf16.mxu0 %v2156_v8  ;;  %1782 = vmatprep.subr.bf16.mxu1 %v2837_v52 }
 0x42b   :  { %969 = vmatpush1.bf16.msra.mxu0 %v2165_v10  ;;  %1783 = vmatpush3.bf16.msra.mxu1 %v2244_v25 }
 0x42c   :  { %970 = vmatprep.subr.bf16.mxu0 %v2171_v11  ;;  %1784 = vmatprep.subr.bf16.mxu1 %v2837_v52 }
 0x42f   :  { %971 = vmatpush1.bf16.msra.mxu0 %v2178_v12  ;;  %1785 = vmatpush3.bf16.msra.mxu1 %v2259_v27 }
 0x430   :  { %972 = vmatprep.subr.bf16.mxu0 %v2188_v14  ;;  %1786 = vmatprep.subr.bf16.mxu1 %v2837_v52 }
 0x433   :  { %973 = vmatpush1.bf16.msra.mxu0 %v2202_v17  ;;  %1787 = vmatpush3.bf16.msra.mxu1 %v2276_v29 }
 0x434   :  { %974 = vmatprep.subr.bf16.mxu0 %v2209_v19  ;;  %1788 = vmatprep.subr.bf16.mxu1 %v2837_v52 }
 0x437   :  { %975 = vmatpush1.bf16.msra.mxu0 %v2223_v21  ;;  %1789 = vmatpush3.bf16.msra.mxu1 %v2289_v30 }
 0x438   :  { %976 = vmatprep.subr.bf16.mxu0 %v2233_v23  ;;  %1790 = vmatprep.subr.bf16.mxu1 %v2837_v52 }
 0x43b   :  { %977 = vmatpush1.bf16.msra.mxu0 %v2239_v24  ;;  %1791 = vmatpush3.bf16.msra.mxu1 %v2299_v31 }
 0x43c   :  { %978 = vmatprep.subr.bf16.mxu0 %v2250_v26  ;;  %1792 = vmatprep.subr.bf16.mxu1 %v2837_v52 }
 0x43f   :  { %979 = vmatpush1.bf16.msra.mxu0 %v2264_v28  ;;  %1793 = vmatpush3.bf16.msra.mxu1 %v2308_v32 }
 0x440   :  { %1068 = vmatprep.subr.bf16.mxu0 %v2567_v5  ;;  %1798 = vmatprep.subr.bf16.mxu1 %v2837_v52 }
 0x4e2   :  { %v894_v6 = vpop.f32.mrf.mxu0  ;;  %v935_v7 = vpop.f32.mrf.mxu1 }
 0x4e3   :  { %v941_v8 = vadd.f32 %v894_v6, %v2361_v59  ;;  %v953_v59 = vadd.f32 %v2392_v40, %v935_v7 }
 0x4e4   :  { %v896_v10 = vpop.f32.mrf.mxu0  ;;  %v1776_v11 = vpop.f32.mrf.mxu1 }
 0x4e5   :  { %v943_v12 = vsub.f32 0.0, %v941_v8  ;;  %v942_v37 = vadd.f32 %v896_v10, %v2363_v62 }
 0x4e6   :  { %v898_v14 = vpop.f32.mrf.mxu0  ;;  %v938_v17 = vpop.f32.mrf.mxu1 }
 0x4e7   :  { %v944_v19 = vmul.f32 1.442695, %v943_v12  ;;  %v948_v58 = vsub.f32 0.0, %v942_v37  ;;  %v2034_v37 = vld [vmem:[%s2820_s2 + $0x68] ss:$12 sps:$4 sm:$0xff]  }
 0x4e8   :  { %v899_v1 = vpop.f32.mrf.mxu0  ;;  %v1777_v34 = vpop.f32.mrf.mxu1 }
 0x4e9   :  { %1978 = vpow2.f32 %v944_v19  ;;  %v949_v49 = vmul.f32 1.442695, %v948_v58  ;;  %v2032_v34 = vld [vmem:[%s2820_s2 + $0x98] ss:$12 sps:$4 sm:$0xff]   ;;  %v2035_v58 = vld [vmem:[%s2820_s2 + $0x50] ss:$12 sps:$4 sm:$0xff]  }
 0x4eb   :  { %1980 = vpow2.f32 %v949_v49  ;;  %v2036_v49 = vld [vmem:[%s2820_s2 + $0x30] ss:$12 sps:$4 sm:$0xff]  }
 0x4f6   :  { %v1979_v36 = vpop.eup %1978 }
 0x4f7   :  { %v946_v2 = vadd.f32 1.0, %v1979_v36  ;;  %v2037_v36 = vld [vmem:[%s2820_s2 + $0x1c] ss:$12 sps:$4 sm:$0xff]  }
 0x4f8   :  { %v1981_v57 = vpop.eup %1980 }
 0x4f9   :  { %1982 = vrcp.f32 %v946_v2  ;;  %v951_v63 = vadd.f32 1.0, %v1981_v57  ;;  %v2038_v2 = vld [vmem:[%s2820_s2 + $0x18] ss:$12 sps:$4 sm:$0xff]  }
 0x4fa   :  { %v2039_v57 = vld [vmem:[%s2820_s2 + $0x4] ss:$12 sps:$4 sm:$0xff]  }
 0x506   :  { %v1983_v39 = vpop.eup %1982 }
 0x507   :  { %v954_v18 = vmul.f32 %v1983_v39, %v953_v59  ;;  %v2839_v39 = vld [vmem:[#allocation7_spill] sm:$0xff] }
 0x509   :  { %v955_v42 = vadd.f32 %v954_v18, %v2377_v44  ;;  %v2590_v44 = vld [vmem:[%s2820_s2 + $0x94] ss:$12 sps:$4 sm:$0xff]  }
 0x50b   :  { %1984 = vtanh.f32 %v955_v42 }
 0x50c   :  { %1986 = vrcp.f32 %v951_v63 }
 0x518   :  { %v1985_v54 = vpop.eup %1984 }
 0x519   :  { %v957_v46 = vsub.f32 %v2527_v50, %v1985_v54  ;;  %v1987_v62 = vpop.eup %1986 }
 0x51b   :  { %v958_v51 = vmul.f32 %v1987_v62, %v957_v46 }
 0x51d   :  { %v2576_v43 = vadd.f32 %v1985_v54, %v958_v51 }
 0x51f   :  { %v963_v9 = vpack.c.bf16 %v2576_v43, %v2576_v43 }
 0x521   :  { %997 = vmatmul.mubr.bf16.vlgmr.msra.gmra.mxu0 %v963_v9  ;;  %1795 = vmatmul.mubr.bf16.vlgmr.msra.gmra.mxu1 %v963_v9 }
 0x522   :  { %1069 = vmatpush1.bf16.msra.mxu0 %v2583_v4  ;;  %1799 = vmatpush3.bf16.msra.mxu1 %v2196_v16  ;;  %v2607_v16 = vld [vmem:[%s2820_s2 + $0x7c] ss:$12 sps:$4 sm:$0xff]  }
 0x523   :  { %1070 = vmatprep.subr.bf16.mxu0 %v2590_v44  ;;  %1800 = vmatprep.subr.bf16.mxu1 %v2837_v52 }
 0x524   :  { %1100 = vmatprep.mubr.bf16.mxu0 %v2838_v60  ;;  %1814 = vmatprep.mubr.msk.bf16.mxu1 %vm2065_vm1, %v2837_v52 }
 0x526   :  { %1071 = vmatpush1.bf16.msra.mxu0 %v2600_v35  ;;  %1801 = vmatpush3.bf16.msra.mxu1 %v2217_v20  ;;  %v2621_v20 = vld [vmem:[%s2820_s2 + $0x64] ss:$12 sps:$4 sm:$0xff]  }
 0x527   :  { %1072 = vmatprep.subr.bf16.mxu0 %v2607_v16  ;;  %1802 = vmatprep.subr.bf16.mxu1 %v2837_v52 }
 0x52a   :  { %1073 = vmatpush1.bf16.msra.mxu0 %v2614_v13  ;;  %1803 = vmatpush3.bf16.msra.mxu1 %v2244_v25  ;;  %v2635_v25 = vld [vmem:[%s2820_s2 + $0x4c] ss:$12 sps:$4 sm:$0xff]  }
 0x52b   :  { %1074 = vmatprep.subr.bf16.mxu0 %v2621_v20  ;;  %1804 = vmatprep.subr.bf16.mxu1 %v2837_v52 }
 0x52e   :  { %1075 = vmatpush1.bf16.msra.mxu0 %v2628_v53  ;;  %1805 = vmatpush3.bf16.msra.mxu1 %v2259_v27  ;;  %v2649_v27 = vld [vmem:[%s2820_s2 + $0x34] ss:$12 sps:$4 sm:$0xff]  }
 0x52f   :  { %1076 = vmatprep.subr.bf16.mxu0 %v2635_v25  ;;  %1806 = vmatprep.subr.bf16.mxu1 %v2837_v52 }
 0x532   :  { %1077 = vmatpush1.bf16.msra.mxu0 %v2642_v48  ;;  %1807 = vmatpush3.bf16.msra.mxu1 %v2276_v29 }
 0x533   :  { %1078 = vmatprep.subr.bf16.mxu0 %v2649_v27  ;;  %1808 = vmatprep.subr.bf16.mxu1 %v2837_v52 }
 0x536   :  { %1079 = vmatpush1.bf16.msra.mxu0 %v2223_v21  ;;  %1809 = vmatpush3.bf16.msra.mxu1 %v2289_v30 }
 0x537   :  { %1080 = vmatprep.subr.bf16.mxu0 %v2233_v23  ;;  %1810 = vmatprep.subr.bf16.mxu1 %v2837_v52 }
 0x53a   :  { %1081 = vmatpush1.bf16.msra.mxu0 %v2239_v24  ;;  %1811 = vmatpush3.bf16.msra.mxu1 %v2299_v31 }
 0x53b   :  { %1082 = vmatprep.subr.bf16.mxu0 %v2250_v26  ;;  %1812 = vmatprep.subr.bf16.mxu1 %v2837_v52 }
 0x53e   :  { %1083 = vmatpush1.bf16.msra.mxu0 %v2264_v28  ;;  %1813 = vmatpush3.bf16.msra.mxu1 %v2308_v32 }
 0x53f   :  { %1172 = vmatprep.subr.bf16.mxu0 %v2567_v5  ;;  %1818 = vmatprep.subr.bf16.mxu1 %v2837_v52 }
 0x5e1   :  { %v998_v21 = vpop.f32.mrf.mxu0  ;;  %v1039_v23 = vpop.f32.mrf.mxu1 }
 0x5e2   :  { %v1045_v29 = vadd.f32 %v998_v21, %v2367_v3  ;;  %v1057_v3 = vadd.f32 %v2392_v40, %v1039_v23 }
 0x5e3   :  { %v1000_v33 = vpop.f32.mrf.mxu0  ;;  %v1796_v24 = vpop.f32.mrf.mxu1 }
 0x5e4   :  { %v1047_v38 = vsub.f32 0.0, %v1045_v29  ;;  %v1046_v28 = vadd.f32 %v1000_v33, %v2371_v22 }
 0x5e5   :  { %v1002_v47 = vpop.f32.mrf.mxu0  ;;  %v1042_v45 = vpop.f32.mrf.mxu1 }
 0x5e6   :  { %v1048_v26 = vmul.f32 1.442695, %v1047_v38  ;;  %v1052_v56 = vsub.f32 0.0, %v1046_v28  ;;  %v1925_v28 = vld [vmem:[%s2823_s5 + $0x20] sm:$0xff]  }
 0x5e7   :  { %v1003_v41 = vpop.f32.mrf.mxu0  ;;  %v1797_v55 = vpop.f32.mrf.mxu1 }
 0x5e8   :  { %1988 = vpow2.f32 %v1048_v26  ;;  %v1053_v50 = vmul.f32 1.442695, %v1052_v56  ;;  %v1922_v26 = vld [vmem:[%s2823_s5 + $0x38] sm:$0xff]   ;;  %v1923_v41 = vld [vmem:[%s2823_s5 + $0x30] sm:$0xff]   ;;  %v1924_v55 = vld [vmem:[%s2823_s5 + $0x28] sm:$0xff]  }
 0x5e9   :  { %v1926_v56 = vld [vmem:[%s2823_s5 + $0x18] sm:$0xff]  }
 0x5ea   :  { %1990 = vpow2.f32 %v1053_v50  ;;  %v1927_v50 = vld [vmem:[%s2823_s5 + $0x10] sm:$0xff]  }
 0x5f5   :  { %v1989_v15 = vpop.eup %1988 }
 0x5f6   :  { %v1050_v5 = vadd.f32 1.0, %v1989_v15  ;;  %v1928_v15 = vld [vmem:[%s2823_s5 + $0x8] sm:$0xff]  }
 0x5f7   :  { %v1991_v6 = vpop.eup %1990 }
 0x5f8   :  { %1992 = vrcp.f32 %v1050_v5  ;;  %v1055_v11 = vadd.f32 1.0, %v1991_v6  ;;  %v1929_v5 = vld [vmem:[%s2823_s5] sm:$0xff]   ;;  %v1930_v6 = vld [vmem:[%s2825_s7 + $0x38] sm:$0xff]  }
 0x605   :  { %v1993_v7 = vpop.eup %1992 }
 0x606   :  { %v1058_v8 = vmul.f32 %v1993_v7, %v1057_v3  ;;  %v1931_v3 = vld [vmem:[%s2825_s7 + $0x30] sm:$0xff]   ;;  %v1932_v7 = vld [vmem:[%s2825_s7 + $0x28] sm:$0xff]  }
 0x608   :  { %v1059_v10 = vadd.f32 %v1058_v8, %v2385_v61  ;;  %v2031_v61 = vld [vmem:[%s2820_s2 + $0xb0] ss:$12 sps:$4 sm:$0xff]   ;;  %v1933_v8 = vld [vmem:[%s2825_s7 + $0x20] sm:$0xff]  }
 0x60a   :  { %1994 = vtanh.f32 %v1059_v10  ;;  %v1934_v10 = vld [vmem:[%s2825_s7 + $0x18] sm:$0xff]  }
 0x60b   :  { %1996 = vrcp.f32 %v1055_v11  ;;  %v1935_v11 = vld [vmem:[%s2825_s7 + $0x10] sm:$0xff]  }
 0x617   :  { %v1995_v12 = vpop.eup %1994 }
 0x618   :  { %v1061_v14 = vsub.f32 %v2576_v43, %v1995_v12  ;;  %v1997_v22 = vpop.eup %1996 }
 0x61a   :  { %v1062_v17 = vmul.f32 %v1997_v22, %v1061_v14  ;;  %v2842_v22 = vld [vmem:[#allocation10_spill] sm:$0xff] }
 0x61c   :  { %v2670_v19 = vadd.f32 %v1995_v12, %v1062_v17 }
 0x61e   :  { %v1067_v1 = vpack.c.bf16 %v2670_v19, %v2670_v19 }
 0x620   :  { %1101 = vmatmul.mubr.bf16.vlgmr.msra.gmra.mxu0 %v1067_v1  ;;  %1815 = vmatmul.mubr.bf16.vlgmr.msra.gmra.mxu1 %v1067_v1 }
 0x621   :  { %1173 = vmatpush1.bf16.msra.mxu0 %v2583_v4  ;;  %1819 = vmatpush3.bf16.msra.mxu1 %v2031_v61  ;;  %v2840_v4 = vld [vmem:[#allocation8_spill] sm:$0xff] }
 0x622   :  { %1174 = vmatprep.subr.bf16.mxu0 %v2590_v44  ;;  %1820 = vmatprep.subr.bf16.mxu1 %v2837_v52 }
 0x623   :  { %1204 = vmatprep.mubr.bf16.mxu0 %v2838_v60  ;;  %1834 = vmatprep.mubr.msk.bf16.mxu1 %vm2065_vm1, %v2837_v52  ;;  %v2033_v60 = vld [vmem:[%s2820_s2 + $0x80] ss:$12 sps:$4 sm:$0xff]  }
 0x625   :  { %1175 = vmatpush1.bf16.msra.mxu0 %v2600_v35  ;;  %1821 = vmatpush3.bf16.msra.mxu1 %v2032_v34 }
 0x626   :  { %1176 = vmatprep.subr.bf16.mxu0 %v2607_v16  ;;  %1822 = vmatprep.subr.bf16.mxu1 %v2837_v52 }
 0x629   :  { %1177 = vmatpush1.bf16.msra.mxu0 %v2614_v13  ;;  %1823 = vmatpush3.bf16.msra.mxu1 %v2033_v60 }
 0x62a   :  { %1178 = vmatprep.subr.bf16.mxu0 %v2621_v20  ;;  %1824 = vmatprep.subr.bf16.mxu1 %v2837_v52 }
 0x62d   :  { %1179 = vmatpush1.bf16.msra.mxu0 %v2628_v53  ;;  %1825 = vmatpush3.bf16.msra.mxu1 %v2034_v37 }
 0x62e   :  { %1180 = vmatprep.subr.bf16.mxu0 %v2635_v25  ;;  %1826 = vmatprep.subr.bf16.mxu1 %v2837_v52 }
 0x631   :  { %1181 = vmatpush1.bf16.msra.mxu0 %v2642_v48  ;;  %1827 = vmatpush3.bf16.msra.mxu1 %v2035_v58 }
 0x632   :  { %1182 = vmatprep.subr.bf16.mxu0 %v2649_v27  ;;  %1828 = vmatprep.subr.bf16.mxu1 %v2837_v52  ;;  %v2841_v27 = vld [vmem:[#allocation6_spill] sm:$0xff] }
 0x635   :  { %1183 = vmatpush1.bf16.msra.mxu0 %v2036_v49  ;;  %1829 = vmatpush3.bf16.msra.mxu1 %v2289_v30  ;;  %v2040_v30 = vld [vmem:[%s2820_s2] ss:$12 sps:$4 sm:$0xff]  }
 0x636   :  { %1184 = vmatprep.subr.bf16.mxu0 %v2037_v36  ;;  %1830 = vmatprep.subr.bf16.mxu1 %v2837_v52 }
 0x639   :  { %1185 = vmatpush1.bf16.msra.mxu0 %v2038_v2  ;;  %1831 = vmatpush3.bf16.msra.mxu1 %v2299_v31 }
 0x63a   :  { %1186 = vmatprep.subr.bf16.mxu0 %v2039_v57  ;;  %1832 = vmatprep.subr.bf16.mxu1 %v2837_v52 }
 0x63d   :  { %1187 = vmatpush1.bf16.msra.mxu0 %v2040_v30  ;;  %1833 = vmatpush3.bf16.msra.mxu1 %v2308_v32 }
 0x63e   :  { %1838 = vmatprep.subr.bf16.mxu0 %v2837_v52  ;;  %1858 = vmatprep.subr.bf16.mxu1 %v2837_v52 }
 0x6e0   :  { %v1102_v59 = vpop.f32.mrf.mxu0  ;;  %v1143_v31 = vpop.f32.mrf.mxu1 }
 0x6e1   :  { %v1149_v18 = vadd.f32 %v1102_v59, %v2839_v39  ;;  %v1161_v53 = vadd.f32 %v2392_v40, %v1143_v31 }
 0x6e2   :  { %v1104_v42 = vpop.f32.mrf.mxu0  ;;  %v1816_v63 = vpop.f32.mrf.mxu1 }
 0x6e3   :  { %v1151_v54 = vsub.f32 0.0, %v1149_v18  ;;  %v1150_v44 = vadd.f32 %v1104_v42, %v2840_v4  ;;  %v2843_v63 = vld [vmem:[#allocation9_spill] sm:$0xff] }
 0x6e4   :  { %v1106_v46 = vpop.f32.mrf.mxu0  ;;  %v1146_v62 = vpop.f32.mrf.mxu1 }
 0x6e5   :  { %v1152_v51 = vmul.f32 1.442695, %v1151_v54  ;;  %v1156_v32 = vsub.f32 0.0, %v1150_v44  ;;  %v1936_v44 = vld [vmem:[%s2825_s7 + $0x8] sm:$0xff]  }
 0x6e6   :  { %v1107_v43 = vpop.f32.mrf.mxu0  ;;  %v1817_v9 = vpop.f32.mrf.mxu1 }
 0x6e7   :  { %1998 = vpow2.f32 %v1152_v51  ;;  %v1157_v35 = vmul.f32 1.442695, %v1156_v32  ;;  %v1555_v32 = vld [vmem:[%s2824_s6] ss:$0 sm:$0xff] }
 0x6e9   :  { %2000 = vpow2.f32 %v1157_v35 }
 0x6f4   :  { %v1999_v16 = vpop.eup %1998 }
 0x6f5   :  { %v1154_v13 = vadd.f32 1.0, %v1999_v16 }
 0x6f6   :  { %v2001_v20 = vpop.eup %2000 }
 0x6f7   :  { %2002 = vrcp.f32 %v1154_v13  ;;  %v1159_v23 = vadd.f32 1.0, %v2001_v20 }
 0x704   :  { %v2003_v25 = vpop.eup %2002 }
 0x705   :  { %v1162_v48 = vmul.f32 %v2003_v25, %v1161_v53 }
 0x707   :  { %v1163_v21 = vadd.f32 %v1162_v48, %v2841_v27 }
 0x709   :  { %2004 = vtanh.f32 %v1163_v21 }
 0x70a   :  { %2006 = vrcp.f32 %v1159_v23 }
 0x716   :  { %v2005_v29 = vpop.eup %2004 }
 0x717   :  { %v1165_v33 = vsub.f32 %v2670_v19, %v2005_v29  ;;  %v2007_v24 = vpop.eup %2006 }
 0x719   :  { %v1166_v38 = vmul.f32 %v2007_v24, %v1165_v33 }
 0x71b   :  { %v2734_v47 = vadd.f32 %v2005_v29, %v1166_v38 }
 0x71d   :  { %v1171_v45 = vpack.c.bf16 %v2734_v47, %v2734_v47 }
 0x71f   :  { %1205 = vmatmul.mubr.bf16.vlgmr.msra.gmra.mxu0 %v1171_v45  ;;  %1835 = vmatmul.mubr.bf16.vlgmr.msra.gmra.mxu1 %v1171_v45 }
 0x720   :  { %1854 = vmatprep.mubr.msk.bf16.mxu0 %vm2065_vm1, %v2837_v52  ;;  %1874 = vmatprep.mubr.msk.bf16.mxu1 %vm2065_vm1, %v2837_v52 }
 0x721   :  { %1839 = vmatpush3.bf16.msra.mxu0 %v1922_v26  ;;  %1859 = vmatpush3.bf16.msra.mxu1 %v1930_v6 }
 0x722   :  { %1840 = vmatprep.subr.bf16.mxu0 %v2837_v52  ;;  %1860 = vmatprep.subr.bf16.mxu1 %v2837_v52 }
 0x725   :  { %1841 = vmatpush3.bf16.msra.mxu0 %v1923_v41  ;;  %1861 = vmatpush3.bf16.msra.mxu1 %v1931_v3 }
 0x726   :  { %1842 = vmatprep.subr.bf16.mxu0 %v2837_v52  ;;  %1862 = vmatprep.subr.bf16.mxu1 %v2837_v52 }
 0x729   :  { %1843 = vmatpush3.bf16.msra.mxu0 %v1924_v55  ;;  %1863 = vmatpush3.bf16.msra.mxu1 %v1932_v7 }
 0x72a   :  { %1844 = vmatprep.subr.bf16.mxu0 %v2837_v52  ;;  %1864 = vmatprep.subr.bf16.mxu1 %v2837_v52 }
 0x72d   :  { %1845 = vmatpush3.bf16.msra.mxu0 %v1925_v28  ;;  %1865 = vmatpush3.bf16.msra.mxu1 %v1933_v8 }
 0x72e   :  { %1846 = vmatprep.subr.bf16.mxu0 %v2837_v52  ;;  %1866 = vmatprep.subr.bf16.mxu1 %v2837_v52 }
 0x731   :  { %1847 = vmatpush3.bf16.msra.mxu0 %v1926_v56  ;;  %1867 = vmatpush3.bf16.msra.mxu1 %v1934_v10 }
 0x732   :  { %1848 = vmatprep.subr.bf16.mxu0 %v2837_v52  ;;  %1868 = vmatprep.subr.bf16.mxu1 %v2837_v52 }
 0x735   :  { %1849 = vmatpush3.bf16.msra.mxu0 %v1927_v50  ;;  %1869 = vmatpush3.bf16.msra.mxu1 %v1935_v11 }
 0x736   :  { %1850 = vmatprep.subr.bf16.mxu0 %v2837_v52  ;;  %1870 = vmatprep.subr.bf16.mxu1 %v2837_v52 }
 0x739   :  { %1851 = vmatpush3.bf16.msra.mxu0 %v1928_v15  ;;  %1871 = vmatpush3.bf16.msra.mxu1 %v1936_v44 }
 0x73a   :  { %1852 = vmatprep.subr.bf16.mxu0 %v2837_v52  ;;  %1872 = vmatprep.subr.bf16.mxu1 %v2837_v52  ;;  %v1564_v52 = vld [vmem:[%s2826_s8] ss:$0 sm:$0xff] }
 0x73d   :  { %1853 = vmatpush3.bf16.msra.mxu0 %v1929_v5 }
 0x7df   :  { %v1206_v12 = vpop.f32.mrf.mxu0  ;;  %v1247_v14 = vpop.f32.mrf.mxu1 }
 0x7e0   :  { %v1253_v17 = vadd.f32 %v1206_v12, %v2842_v22  ;;  %v1265_v39 = vadd.f32 %v2392_v40, %v1247_v14  ;;  %v1937_v40 = vld [vmem:[%s2825_s7] sm:$0xff]   ;;  %s2066_s7 = smov [#allocation3]  }
 0x7e1   :  { %v1208_v19 = vpop.f32.mrf.mxu0  ;;  %v1836_v1 = vpop.f32.mrf.mxu1  ;;  %1873 = vmatpush3.bf16.msra.mxu1 %v1937_v40  ;;  %s1507_s6 = sshll.u32 %s2066_s7, 4  ;;  %s1508_s6 = int_to_ptr.vmem [resolvable:$true] %s1507_s6 }
 0x7e2   :  { %v1255_v61 = vsub.f32 0.0, %v1253_v17  ;;  %v1254_v36 = vadd.f32 %v1208_v19, %v2387_v0  ;;  %s2041_s4 = scalar_lea.vmem %s1508_s6, 128  ;;  %p2046_p1 = scmp.lt.s32.totalorder %s1508_s6, %s1508_s6 }
 0x7e3   :  { %v1210_v34 = vpop.f32.mrf.mxu0  ;;  %v1250_v60 = vpop.f32.mrf.mxu1  ;;  %p2042_p0 = scmp.ne.s32.totalorder %s1508_s6, %s2041_s4  ;;  %p2047_p2 = scmp.lt.s32.totalorder %s2041_s4, %s2041_s4 }
 0x7e4   :  { %v1256_v37 = vmul.f32 1.442695, %v1255_v61  ;;  %v1260_v2 = vsub.f32 0.0, %v1254_v36 }
 0x7e5   :  { %v1211_v58 = vpop.f32.mrf.mxu0  ;;  %v1837_v49 = vpop.f32.mrf.mxu1  ;;  %p2048_p3 = por %p2047_p2, %p2046_p1 }
 0x7e6   :  { %2008 = vpow2.f32 %v1256_v37  ;;  %v1261_v57 = vmul.f32 1.442695, %v1260_v2 }
 0x7e7   :  { %p2049_p4 = pnand %p2048_p3, %p2042_p0 }
 0x7e8   :  { %2010 = vpow2.f32 %v1261_v57 }
 0x7f3   :  { %v2009_v30 = vpop.eup %2008 }
 0x7f4   :  { %v1258_v59 = vadd.f32 1.0, %v2009_v30 }
 0x7f5   :  { %v2011_v31 = vpop.eup %2010 }
 0x7f6   :  { %2012 = vrcp.f32 %v1258_v59  ;;  %v1263_v46 = vadd.f32 1.0, %v2011_v31 }
 0x803   :  { %v2013_v18 = vpop.eup %2012 }
 0x804   :  { %v1266_v42 = vmul.f32 %v2013_v18, %v1265_v39 }
 0x806   :  { %v1267_v54 = vadd.f32 %v1266_v42, %v2843_v63 }
 0x808   :  { %2014 = vtanh.f32 %v1267_v54 }
 0x809   :  { %2016 = vrcp.f32 %v1263_v46 }
 0x815   :  { %v2015_v62 = vpop.eup %2014 }
 0x816   :  { %v1269_v51 = vsub.f32 %v2734_v47, %v2015_v62  ;;  %v2017_v0 = vpop.eup %2016 }
 0x818   :  { %v1270_v43 = vmul.f32 %v2017_v0, %v1269_v51 }
 0x81a   :  { %v1271_v9 = vadd.f32 %v2015_v62, %v1270_v43 }
 0x81c   :  { %v1272_v4 = vpack.c.bf16 %v1271_v9, %v1271_v9 }
 0x81e   :  { %1855 = vmatmul.mubr.bf16.vlgmr.msra.gmra.mxu0 %v1272_v4 }
 0x8de   :  { %v1378_v35 = vpop.f32.mrf.mxu0 }
 0x8df   :  { %v1379_v16 = vadd.f32 %v1555_v32, %v1378_v35 }
 0x8e0   :  { %v1856_v13 = vpop.f32.mrf.mxu0 }
 0x8e1   :  { %v1384_v20 = vmax.f32 %v1379_v16, 0.0 }
 0x8e2   :  { %v1381_v53 = vpop.f32.mrf.mxu0 }
 0x8e3   :  { %v1385_v25 = vpack.c.bf16 %v1384_v20, %v1384_v20 }
 0x8e4   :  { %v1857_v48 = vpop.f32.mrf.mxu0 }
 0x8e5   :  { %1875 = vmatmul.mubr.bf16.vlgmr.msra.gmra.mxu1 %v1385_v25 }
 0x9a5   :  { %v1491_v27 = vpop.f32.mrf.mxu1 }
 0x9a6   :  { %v1492_v21 = vadd.f32 %v1564_v52, %v1491_v27 }
 0x9a7   :  { %v1876_v23 = vpop.f32.mrf.mxu1 }
 0x9a8   :  { %2018 = vtanh.f32 %v1492_v21 }
 0x9a9   :  { %v1494_v29 = vpop.f32.mrf.mxu1 }
 0x9ab   :  { %v1877_v33 = vpop.f32.mrf.mxu1 }
 0x9b5   :  { %v2019_v24 = vpop.eup %2018 }
 0x9b6   :  { %v1498_v38 = vmul.f32 2.0, %v2019_v24 }
 0x9b8   :  { %1500 = vst.msk [vmem:[#allocation3] sm:$0xff] %vm1499_vm2, %v1498_v38 }
 0x9b9   :  { %2052 = shalt.err (!%p2049_p4)
}
 0x9ba   :  { %1510 = dma.vmem_to_hbm [thread:$0]  %s1508_s6, 128, %s2827_s9, [#allocation4]  }
 0x9bb   :  { %2061 = dma.done.wait [#allocation4], 128  }
 0x9bc   :  { %2062 = vsyncadd [#allocation4], 4294967168 }
 0x9bd   :  { %1514 = vsyncpa [#allocation4], 1 }

</bundles_post_ra>
